<compile_context>
chip_gen: v7x
topology: tpu7x:2x2x1
jax: 0.10.0
libtpu: 0.0.40
codegen_flags: <defaults>
</compile_context>

<pallas_src>
import functools

import jax
import jax.numpy as jnp
from jax import lax
from jax.experimental import pallas as pl
from jax.experimental.pallas import tpu as pltpu


# ---------------------------------------------------------------------------
# Tile selection: largest hardware-aligned tile (multiple of `unit`) that
# divides `dim` and is <= `target`.  If `dim` is not a multiple of `unit`, use
# the full extent (a full-dim block bypasses the (8,128) divisibility rule),
# so NO padded operand copies are ever materialized.
# ---------------------------------------------------------------------------
def _pick_tile(dim, unit, target):
    if dim % unit != 0:
        return dim
    best = unit
    for t in range(unit, min(dim, target) + 1, unit):
        if dim % t == 0:
            best = t
    return best


# ---------------------------------------------------------------------------
# Pallas kernel 1: matmul with fused bias (+ optional ReLU).
# K is kept fully resident (single block) -> no reduction grid axis, no
# accumulator scratch, bias DMA'd exactly once per output tile.
# ---------------------------------------------------------------------------
def _matmul_bias_kernel(a_ref, b_ref, bias_ref, o_ref, *, relu):
    out = jnp.dot(a_ref[...], b_ref[...], preferred_element_type=jnp.float32)
    out = out + bias_ref[...]                       # f32 epilogue (v5e-safe VPU)
    if relu:
        out = jnp.maximum(out, 0.0)
    o_ref[...] = out.astype(o_ref.dtype)


def pallas_matmul(a, b, bias, *, relu=False, tm_target=512, tn_target=512):
    """relu(a @ b + bias).  a:[M,K] bf16, b:[K,N] bf16, bias:[1,N] f32."""
    M, K = a.shape
    K2, N = b.shape
    assert K == K2 and bias.shape == (1, N)

    tm = _pick_tile(M, 8, tm_target)      # full M for M=2 (lnet)
    tn = _pick_tile(N, 128, tn_target)    # N=768 -> tn=384 -> 2 parallel blocks
    grid = (M // tm, N // tn)

    return pl.pallas_call(
        functools.partial(_matmul_bias_kernel, relu=relu),
        out_shape=jax.ShapeDtypeStruct((M, N), jnp.float32),
        grid_spec=pltpu.PrefetchScalarGridSpec(
            num_scalar_prefetch=0,
            grid=grid,
            in_specs=[
                pl.BlockSpec((tm, K), lambda i, j: (i, 0)),   # full-K block
                pl.BlockSpec((K, tn), lambda i, j: (0, j)),
                pl.BlockSpec((1, tn), lambda i, j: (0, j)),
            ],
            out_specs=pl.BlockSpec((tm, tn), lambda i, j: (i, j)),
        ),
        compiler_params=pltpu.CompilerParams(
            dimension_semantics=("parallel", "parallel")),
    )(a, b, bias)


# ---------------------------------------------------------------------------
# Pallas kernel 2: fused CNet heads.
# One launch per forward: 1x1 dp-head conv (per-pixel dense), global average
# pool -> latent codes (ReLU), camera head from codes.  dp_feature is read
# from HBM exactly once.  Grid over batch -> 2 parallel blocks (v7x megacore).
# ---------------------------------------------------------------------------
def _cnet_heads_kernel(feat_ref, wdp_ref, bdp_ref, wcode_ref, bcode_ref,
                       wcam_ref, bcam_ref, dp_ref, codes_ref, cam_ref):
    feat = feat_ref[0]                                            # [P, C] bf16

    # 1x1 conv head (densepose / IUV map), f32 accumulate + bias.
    dp = jnp.dot(feat, wdp_ref[...], preferred_element_type=jnp.float32)
    dp_ref[0] = (dp + bdp_ref[...]).astype(dp_ref.dtype)

    # Global average pool -> codes (ReLU).
    pooled = jnp.mean(feat.astype(jnp.float32), axis=0, keepdims=True)  # [1, C]
    codes = jnp.dot(pooled.astype(jnp.bfloat16), wcode_ref[...],
                    preferred_element_type=jnp.float32) + bcode_ref[...]
    codes = jnp.maximum(codes, 0.0)
    codes_ref[0] = codes.astype(codes_ref.dtype)

    # Camera head from codes.
    cam = jnp.dot(codes.astype(jnp.bfloat16), wcam_ref[...],
                  preferred_element_type=jnp.float32) + bcam_ref[...]
    cam_ref[0] = cam.astype(cam_ref.dtype)


def cnet_heads(feat_bpc, wdp, bdp, wcode, bcode, wcam, bcam):
    """feat_bpc: [B, P, C] bf16 -> (pred_dp [B,P,3], codes [B,code], cam [B,3])."""
    B, P, C = feat_bpc.shape
    code_dim = wcode.shape[1]
    dp, codes3, cam3 = pl.pallas_call(
        _cnet_heads_kernel,
        out_shape=(jax.ShapeDtypeStruct((B, P, 3), jnp.float32),
                   jax.ShapeDtypeStruct((B, 1, code_dim), jnp.float32),
                   jax.ShapeDtypeStruct((B, 1, 3), jnp.float32)),
        grid_spec=pltpu.PrefetchScalarGridSpec(
            num_scalar_prefetch=0,
            grid=(B,),
            in_specs=[
                pl.BlockSpec((1, P, C), lambda b: (b, 0, 0)),
                pl.BlockSpec((C, 3), lambda b: (0, 0)),
                pl.BlockSpec((1, 3), lambda b: (0, 0)),
                pl.BlockSpec((C, code_dim), lambda b: (0, 0)),
                pl.BlockSpec((1, code_dim), lambda b: (0, 0)),
                pl.BlockSpec((code_dim, 3), lambda b: (0, 0)),
                pl.BlockSpec((1, 3), lambda b: (0, 0)),
            ],
            out_specs=[
                pl.BlockSpec((1, P, 3), lambda b: (b, 0, 0)),
                pl.BlockSpec((1, 1, code_dim), lambda b: (b, 0, 0)),
                pl.BlockSpec((1, 1, 3), lambda b: (b, 0, 0)),
            ],
        ),
        compiler_params=pltpu.CompilerParams(
            dimension_semantics=("parallel",)),
    )(feat_bpc, wdp, bdp, wcode, bcode, wcam, bcam)
    return dp, codes3[:, 0, :], cam3[:, 0, :]


# ---------------------------------------------------------------------------
# Small 3x3 stride-2 convs: XLA conv (no 9x im2col duplication, no K padding).
# ---------------------------------------------------------------------------
def conv2d_xla(x_nhwc, w_hwio, bias, stride, pad, relu):
    y = lax.conv_general_dilated(
        x_nhwc, w_hwio, window_strides=(stride, stride),
        padding=((pad, pad), (pad, pad)),
        dimension_numbers=('NHWC', 'HWIO', 'NHWC'))
    y = y + bias
    return jnp.maximum(y, 0.0) if relu else y


# ---------------------------------------------------------------------------
# Parameter / sampler construction (deterministic, in-script).
# Weights are created once in the exact layout/dtype the kernels consume.
# ---------------------------------------------------------------------------
def build_resample_matrix(vt_uv, H, W):
    """Dense bilinear-sampling matrix S [V, H*W] (Index_UV_Generator.resample)."""
    u = vt_uv[:, 0] * (W - 1)
    v = vt_uv[:, 1] * (H - 1)
    x0 = jnp.floor(u).astype(jnp.int32)
    y0 = jnp.floor(v).astype(jnp.int32)
    x1 = jnp.minimum(x0 + 1, W - 1)
    y1 = jnp.minimum(y0 + 1, H - 1)
    wx = u - x0.astype(jnp.float32)
    wy = v - y0.astype(jnp.float32)
    HW = H * W

    def oh(y, x, w):
        return jax.nn.one_hot(y * W + x, HW, dtype=jnp.float32) * w[:, None]

    return (oh(y0, x0, (1 - wx) * (1 - wy)) + oh(y0, x1, wx * (1 - wy)) +
            oh(y1, x0, (1 - wx) * wy) + oh(y1, x1, wx * wy))


def init_params(key, *, img_res, warp_level, uv_res, feat_c, code_dim, n_verts):
    ks = jax.random.split(key, 8)
    dp_res = img_res // (2 ** warp_level)

    def w(k, shape, fan_in, dtype=jnp.float32):
        return (jax.random.normal(k, shape, jnp.float32)
                / jnp.sqrt(float(fan_in))).astype(dtype)

    lnet_in = dp_res * dp_res * (3 + feat_c) + code_dim
    p = {
        # CNet trunk: 3x3 stride-2 convs, HWIO layout (XLA conv path), f32.
        'conv1_w': w(ks[0], (3, 3, 3, feat_c), 3 * 9),
        'conv1_b': jnp.zeros((feat_c,), jnp.float32),
        'conv2_w': w(ks[1], (3, 3, feat_c, feat_c), feat_c * 9),
        'conv2_b': jnp.zeros((feat_c,), jnp.float32),
        # CNet heads (fused Pallas kernel): [in, out] layout, bf16 weights.
        'dp_w':   w(ks[2], (feat_c, 3), feat_c, jnp.bfloat16),
        'dp_b':   jnp.zeros((1, 3), jnp.float32),
        'code_w': w(ks[3], (feat_c, code_dim), feat_c, jnp.bfloat16),
        'code_b': jnp.zeros((1, code_dim), jnp.float32),
        'cam_w':  w(ks[5], (code_dim, 3), code_dim, jnp.bfloat16),
        'cam_b':  jnp.zeros((1, 3), jnp.float32),
        # LNet stand-in (Pallas matmul): bf16 weights pre-shaped [K,N], f32 bias [1,N].
        'uv_w':   w(ks[4], (lnet_in, uv_res * uv_res * 3), lnet_in, jnp.bfloat16),
        'uv_b':   jnp.zeros((1, uv_res * uv_res * 3), jnp.float32),
    }
    vt_uv = jax.random.uniform(ks[6], (n_verts, 2), jnp.float32, 0.0, 1.0)
    sampler_S = build_resample_matrix(vt_uv, uv_res, uv_res)   # [V, uv*uv]
    return p, sampler_S


# ---------------------------------------------------------------------------
# DMR.forward (detach=True path: CNet -> LNet -> sampler.resample).
# ---------------------------------------------------------------------------
def dmr_forward(params, sampler_S, images_nchw, *, uv_res, dp_res, feat_c):
    images_nchw = lax.stop_gradient(images_nchw)    # torch.no_grad() / detach=True
    x = jnp.transpose(images_nchw, (0, 2, 3, 1))    # NCHW -> NHWC
    B = x.shape[0]

    # ---- CNet trunk (DPNet stand-in): two stride-2 3x3 convs ----
    f1 = conv2d_xla(x, params['conv1_w'], params['conv1_b'], 2, 1, True)
    dp_feature = conv2d_xla(f1, params['conv2_w'], params['conv2_b'], 2, 1, True)
    # dp_feature: [B, dp, dp, C]

    # ---- CNet heads: single fused Pallas kernel ----
    feat_flat = dp_feature.reshape(B, dp_res * dp_res, feat_c).astype(jnp.bfloat16)
    pred_dp_flat, codes, pred_camera = cnet_heads(
        feat_flat, params['dp_w'], params['dp_b'],
        params['code_w'], params['code_b'],
        params['cam_w'], params['cam_b'])
    pred_dp_nhwc = pred_dp_flat.reshape(B, dp_res, dp_res, 3)

    # ---- LNet stand-in: one wide dense layer -> UV map (Pallas matmul) ----
    lnet_in = jnp.concatenate(
        [pred_dp_flat.reshape(B, -1), dp_feature.reshape(B, -1), codes],
        axis=1).astype(jnp.bfloat16)                            # [B, 1248]
    uv_flat = pallas_matmul(lnet_in, params['uv_w'], params['uv_b'], relu=False)
    pred_uv_map = uv_flat.reshape(B, uv_res, uv_res, 3)         # BHWC (DecoMR)

    # ---- sampler.resample: bilinear UV gather as a dense matmul (XLA) ----
    # TODO(synk): at real DecoMR sizes (V~6890, uv_res=128) this must become a
    # sparse/gather Pallas kernel; a dense S matrix would be ~430 MB f32.
    pred_vertices = jnp.einsum('vh,bhc->bvc', sampler_S,
                               pred_uv_map.reshape(B, uv_res * uv_res, 3))

    pred_dp = jnp.transpose(pred_dp_nhwc, (0, 3, 1, 2))         # back to NCHW

    return {'pred_vertices': pred_vertices,
            'camera': pred_camera,
            'uv_map': pred_uv_map,
            'dp_map': pred_dp}


# ---------------------------------------------------------------------------
if __name__ == "__main__":
    # Small, module-consistent configuration:
    #   options.img_res=32, options.warp_level=2 -> dp_res=8, options.uv_res=16
    IMG_RES, WARP_LEVEL, UV_RES = 32, 2, 16
    FEAT_C, CODE_DIM, N_VERTS, BATCH = 16, 32, 64, 2
    DP_RES = IMG_RES // 2 ** WARP_LEVEL

    key = jax.random.PRNGKey(0)
    k_param, k_img = jax.random.split(key)
    params, sampler_S = init_params(
        k_param, img_res=IMG_RES, warp_level=WARP_LEVEL, uv_res=UV_RES,
        feat_c=FEAT_C, code_dim=CODE_DIM, n_verts=N_VERTS)

    images = jax.random.normal(k_img, (BATCH, 3, IMG_RES, IMG_RES), jnp.float32)

    fwd = jax.jit(functools.partial(dmr_forward, uv_res=UV_RES,
                                    dp_res=DP_RES, feat_c=FEAT_C))
    out = fwd(params, sampler_S, images)
    jax.block_until_ready(out)

    assert out['pred_vertices'].shape == (BATCH, N_VERTS, 3)
    assert out['camera'].shape == (BATCH, 3)
    assert out['uv_map'].shape == (BATCH, UV_RES, UV_RES, 3)
    assert out['dp_map'].shape == (BATCH, 3, DP_RES, DP_RES)
    print("KERNEL_OK")
</pallas_src>

<mosaic_0001>
module attributes {stable_mosaic.version = 11 : i64} {
  func.func @_cnet_heads_kernel(%arg0: i32, %arg1: memref<1x64x16xbf16, #tpu.memory_space<vmem>>, %arg2: memref<16x3xbf16, #tpu.memory_space<vmem>>, %arg3: memref<1x3xf32, #tpu.memory_space<vmem>>, %arg4: memref<16x32xbf16, #tpu.memory_space<vmem>>, %arg5: memref<1x32xf32, #tpu.memory_space<vmem>>, %arg6: memref<32x3xbf16, #tpu.memory_space<vmem>>, %arg7: memref<1x3xf32, #tpu.memory_space<vmem>>, %arg8: memref<1x64x3xf32, #tpu.memory_space<vmem>>, %arg9: memref<1x1x32xf32, #tpu.memory_space<vmem>>, %arg10: memref<1x1x3xf32, #tpu.memory_space<vmem>>) attributes {dimension_semantics = [#tpu.dimension_semantics<parallel>], iteration_bounds = array<i64: 2>, scalar_prefetch = 0 : i64, scratch_operands = 0 : i64, tpu.core_type = #tpu.core_type<tc>, window_params = [{transform_indices = @transform_0, window_bounds = array<i64: 1, 64, 16>}, {pipeline_mode = #tpu.pipeline_mode<synchronous>, transform_indices = @transform_1, window_bounds = array<i64: 16, 3>}, {pipeline_mode = #tpu.pipeline_mode<synchronous>, transform_indices = @transform_2, window_bounds = array<i64: 1, 3>}, {pipeline_mode = #tpu.pipeline_mode<synchronous>, transform_indices = @transform_3, window_bounds = array<i64: 16, 32>}, {pipeline_mode = #tpu.pipeline_mode<synchronous>, transform_indices = @transform_4, window_bounds = array<i64: 1, 32>}, {pipeline_mode = #tpu.pipeline_mode<synchronous>, transform_indices = @transform_5, window_bounds = array<i64: 32, 3>}, {pipeline_mode = #tpu.pipeline_mode<synchronous>, transform_indices = @transform_6, window_bounds = array<i64: 1, 3>}, {transform_indices = @transform_7, window_bounds = array<i64: 1, 64, 3>}, {transform_indices = @transform_8, window_bounds = array<i64: 1, 1, 32>}, {transform_indices = @transform_9, window_bounds = array<i64: 1, 1, 3>}]} {
    %c0 = arith.constant 0 : index
    %c0_0 = arith.constant 0 : index
    %c0_1 = arith.constant 0 : index
    %0 = vector.load %arg1[%c0, %c0_0, %c0_1] : memref<1x64x16xbf16, #tpu.memory_space<vmem>>, vector<1x64x16xbf16>
    %1 = vector.shape_cast %0 : vector<1x64x16xbf16> to vector<64x16xbf16>
    %c0_2 = arith.constant 0 : index
    %c0_3 = arith.constant 0 : index
    %2 = vector.load %arg2[%c0_2, %c0_3] : memref<16x3xbf16, #tpu.memory_space<vmem>>, vector<16x3xbf16>
    %cst = arith.constant dense<0.000000e+00> : vector<64x3xf32>
    %3 = tpu.matmul %1, %2, %cst {dimension_numbers = #tpu.dot_dimension_numbers<[1], [0], [0], [1], [0, 0, 1, 1], [], []>} : vector<64x16xbf16>, vector<16x3xbf16>, vector<64x3xf32> -> vector<64x3xf32>
    %c0_4 = arith.constant 0 : index
    %c0_5 = arith.constant 0 : index
    %4 = vector.load %arg3[%c0_4, %c0_5] : memref<1x3xf32, #tpu.memory_space<vmem>>, vector<1x3xf32>
    %5 = vector.broadcast %4 : vector<1x3xf32> to vector<64x3xf32>
    %6 = arith.addf %3, %5 : vector<64x3xf32>
    %c0_6 = arith.constant 0 : index
    %c0_7 = arith.constant 0 : index
    %c0_8 = arith.constant 0 : index
    %7 = vector.load %arg8[%c0_6, %c0_7, %c0_8] : memref<1x64x3xf32, #tpu.memory_space<vmem>>, vector<1x64x3xf32>
    %8 = vector.shape_cast %7 : vector<1x64x3xf32> to vector<64x3xf32>
    %9 = vector.shape_cast %6 : vector<64x3xf32> to vector<1x64x3xf32>
    tpu.vector_store %arg8[%c0_6, %c0_7, %c0_8], %9 {strides = array<i32>} : memref<1x64x3xf32, #tpu.memory_space<vmem>>, vector<1x64x3xf32>,
    %10 = arith.extf %1 : vector<64x16xbf16> to vector<64x16xf32>
    %cst_9 = arith.constant dense<0.000000e+00> : vector<16xf32>
    %11 = vector.multi_reduction <add>, %10, %cst_9 [0] : vector<64x16xf32> to vector<16xf32>
    %12 = vector.shape_cast %11 : vector<16xf32> to vector<1x16xf32>
    %cst_10 = arith.constant 6.400000e+01 : f32
    %13 = vector.broadcast %cst_10 : f32 to vector<1x16xf32>
    %14 = arith.divf %12, %13 : vector<1x16xf32>
    %15 = arith.truncf %14 : vector<1x16xf32> to vector<1x16xbf16>
    %c0_11 = arith.constant 0 : index
    %c0_12 = arith.constant 0 : index
    %16 = vector.load %arg4[%c0_11, %c0_12] : memref<16x32xbf16, #tpu.memory_space<vmem>>, vector<16x32xbf16>
    %cst_13 = arith.constant dense<0.000000e+00> : vector<1x32xf32>
    %17 = tpu.matmul %15, %16, %cst_13 {dimension_numbers = #tpu.dot_dimension_numbers<[1], [0], [0], [1], [0, 0, 1, 1], [], []>} : vector<1x16xbf16>, vector<16x32xbf16>, vector<1x32xf32> -> vector<1x32xf32>
    %c0_14 = arith.constant 0 : index
    %c0_15 = arith.constant 0 : index
    %18 = vector.load %arg5[%c0_14, %c0_15] : memref<1x32xf32, #tpu.memory_space<vmem>>, vector<1x32xf32>
    %19 = arith.addf %17, %18 : vector<1x32xf32>
    %cst_16 = arith.constant 0.000000e+00 : f32
    %20 = vector.broadcast %cst_16 : f32 to vector<1x32xf32>
    %21 = arith.maximumf %19, %20 : vector<1x32xf32>
    %c0_17 = arith.constant 0 : index
    %c0_18 = arith.constant 0 : index
    %c0_19 = arith.constant 0 : index
    %22 = vector.load %arg9[%c0_17, %c0_18, %c0_19] : memref<1x1x32xf32, #tpu.memory_space<vmem>>, vector<1x1x32xf32>
    %23 = vector.shape_cast %22 : vector<1x1x32xf32> to vector<1x32xf32>
    %24 = vector.shape_cast %21 : vector<1x32xf32> to vector<1x1x32xf32>
    tpu.vector_store %arg9[%c0_17, %c0_18, %c0_19], %24 {strides = array<i32>} : memref<1x1x32xf32, #tpu.memory_space<vmem>>, vector<1x1x32xf32>,
    %25 = arith.truncf %21 : vector<1x32xf32> to vector<1x32xbf16>
    %c0_20 = arith.constant 0 : index
    %c0_21 = arith.constant 0 : index
    %26 = vector.load %arg6[%c0_20, %c0_21] : memref<32x3xbf16, #tpu.memory_space<vmem>>, vector<32x3xbf16>
    %cst_22 = arith.constant dense<0.000000e+00> : vector<1x3xf32>
    %27 = tpu.matmul %25, %26, %cst_22 {dimension_numbers = #tpu.dot_dimension_numbers<[1], [0], [0], [1], [0, 0, 1, 1], [], []>} : vector<1x32xbf16>, vector<32x3xbf16>, vector<1x3xf32> -> vector<1x3xf32>
    %c0_23 = arith.constant 0 : index
    %c0_24 = arith.constant 0 : index
    %28 = vector.load %arg7[%c0_23, %c0_24] : memref<1x3xf32, #tpu.memory_space<vmem>>, vector<1x3xf32>
    %29 = arith.addf %27, %28 : vector<1x3xf32>
    %c0_25 = arith.constant 0 : index
    %c0_26 = arith.constant 0 : index
    %c0_27 = arith.constant 0 : index
    %30 = vector.load %arg10[%c0_25, %c0_26, %c0_27] : memref<1x1x3xf32, #tpu.memory_space<vmem>>, vector<1x1x3xf32>
    %31 = vector.shape_cast %30 : vector<1x1x3xf32> to vector<1x3xf32>
    %32 = vector.shape_cast %29 : vector<1x3xf32> to vector<1x1x3xf32>
    tpu.vector_store %arg10[%c0_25, %c0_26, %c0_27], %32 {strides = array<i32>} : memref<1x1x3xf32, #tpu.memory_space<vmem>>, vector<1x1x3xf32>,
    return
  }
  func.func @transform_0(%arg0: i32) -> (i32, i32, i32) {
    %c0_i32 = arith.constant 0 : i32
    %c0_i32_0 = arith.constant 0 : i32
    %c0_i32_1 = arith.constant 0 : i32
    return %arg0, %c0_i32, %c0_i32_0 : i32, i32, i32
  }
  func.func @transform_1(%arg0: i32) -> (i32, i32) {
    %c0_i32 = arith.constant 0 : i32
    %c0_i32_0 = arith.constant 0 : i32
    %c0_i32_1 = arith.constant 0 : i32
    return %c0_i32, %c0_i32_0 : i32, i32
  }
  func.func @transform_2(%arg0: i32) -> (i32, i32) {
    %c0_i32 = arith.constant 0 : i32
    %c0_i32_0 = arith.constant 0 : i32
    %c0_i32_1 = arith.constant 0 : i32
    return %c0_i32, %c0_i32_0 : i32, i32
  }
  func.func @transform_3(%arg0: i32) -> (i32, i32) {
    %c0_i32 = arith.constant 0 : i32
    %c0_i32_0 = arith.constant 0 : i32
    %c0_i32_1 = arith.constant 0 : i32
    return %c0_i32, %c0_i32_0 : i32, i32
  }
  func.func @transform_4(%arg0: i32) -> (i32, i32) {
    %c0_i32 = arith.constant 0 : i32
    %c0_i32_0 = arith.constant 0 : i32
    %c0_i32_1 = arith.constant 0 : i32
    return %c0_i32, %c0_i32_0 : i32, i32
  }
  func.func @transform_5(%arg0: i32) -> (i32, i32) {
    %c0_i32 = arith.constant 0 : i32
    %c0_i32_0 = arith.constant 0 : i32
    %c0_i32_1 = arith.constant 0 : i32
    return %c0_i32, %c0_i32_0 : i32, i32
  }
  func.func @transform_6(%arg0: i32) -> (i32, i32) {
    %c0_i32 = arith.constant 0 : i32
    %c0_i32_0 = arith.constant 0 : i32
    %c0_i32_1 = arith.constant 0 : i32
    return %c0_i32, %c0_i32_0 : i32, i32
  }
  func.func @transform_7(%arg0: i32) -> (i32, i32, i32) {
    %c0_i32 = arith.constant 0 : i32
    %c0_i32_0 = arith.constant 0 : i32
    %c0_i32_1 = arith.constant 0 : i32
    return %arg0, %c0_i32, %c0_i32_0 : i32, i32, i32
  }
  func.func @transform_8(%arg0: i32) -> (i32, i32, i32) {
    %c0_i32 = arith.constant 0 : i32
    %c0_i32_0 = arith.constant 0 : i32
    %c0_i32_1 = arith.constant 0 : i32
    return %arg0, %c0_i32, %c0_i32_0 : i32, i32, i32
  }
  func.func @transform_9(%arg0: i32) -> (i32, i32, i32) {
    %c0_i32 = arith.constant 0 : i32
    %c0_i32_0 = arith.constant 0 : i32
    %c0_i32_1 = arith.constant 0 : i32
    return %arg0, %c0_i32, %c0_i32_0 : i32, i32, i32
  }
}

module attributes {stable_mosaic.version = 11 : i64} {
  func.func @_matmul_bias_kernel(%arg0: i32, %arg1: i32, %arg2: memref<2x1248xbf16, #tpu.memory_space<vmem>>, %arg3: memref<1248x384xbf16, #tpu.memory_space<vmem>>, %arg4: memref<1x384xf32, #tpu.memory_space<vmem>>, %arg5: memref<2x384xf32, #tpu.memory_space<vmem>>) attributes {dimension_semantics = [#tpu.dimension_semantics<parallel>, #tpu.dimension_semantics<parallel>], iteration_bounds = array<i64: 1, 2>, scalar_prefetch = 0 : i64, scratch_operands = 0 : i64, tpu.core_type = #tpu.core_type<tc>, window_params = [{transform_indices = @transform_0, window_bounds = array<i64: 2, 1248>}, {transform_indices = @transform_1, window_bounds = array<i64: 1248, 384>}, {transform_indices = @transform_2, window_bounds = array<i64: 1, 384>}, {transform_indices = @transform_3, window_bounds = array<i64: 2, 384>}]} {
    %c0 = arith.constant 0 : index
    %c0_0 = arith.constant 0 : index
    %0 = vector.load %arg2[%c0, %c0_0] : memref<2x1248xbf16, #tpu.memory_space<vmem>>, vector<2x1248xbf16>
    %c0_1 = arith.constant 0 : index
    %c0_2 = arith.constant 0 : index
    %1 = vector.load %arg3[%c0_1, %c0_2] : memref<1248x384xbf16, #tpu.memory_space<vmem>>, vector<1248x384xbf16>
    %cst = arith.constant dense<0.000000e+00> : vector<2x384xf32>
    %2 = tpu.matmul %0, %1, %cst {dimension_numbers = #tpu.dot_dimension_numbers<[1], [0], [0], [1], [0, 0, 1, 1], [], []>} : vector<2x1248xbf16>, vector<1248x384xbf16>, vector<2x384xf32> -> vector<2x384xf32>
    %c0_3 = arith.constant 0 : index
    %c0_4 = arith.constant 0 : index
    %3 = vector.load %arg4[%c0_3, %c0_4] : memref<1x384xf32, #tpu.memory_space<vmem>>, vector<1x384xf32>
    %4 = vector.broadcast %3 : vector<1x384xf32> to vector<2x384xf32>
    %5 = arith.addf %2, %4 : vector<2x384xf32>
    %c0_5 = arith.constant 0 : index
    %c0_6 = arith.constant 0 : index
    %6 = vector.load %arg5[%c0_5, %c0_6] : memref<2x384xf32, #tpu.memory_space<vmem>>, vector<2x384xf32>
    tpu.vector_store %arg5[%c0_5, %c0_6], %5 {strides = array<i32>} : memref<2x384xf32, #tpu.memory_space<vmem>>, vector<2x384xf32>,
    return
  }
  func.func @transform_0(%arg0: i32, %arg1: i32) -> (i32, i32) {
    %c0_i32 = arith.constant 0 : i32
    %c0_i32_0 = arith.constant 0 : i32
    return %arg0, %c0_i32 : i32, i32
  }
  func.func @transform_1(%arg0: i32, %arg1: i32) -> (i32, i32) {
    %c0_i32 = arith.constant 0 : i32
    %c0_i32_0 = arith.constant 0 : i32
    return %c0_i32, %arg1 : i32, i32
  }
  func.func @transform_2(%arg0: i32, %arg1: i32) -> (i32, i32) {
    %c0_i32 = arith.constant 0 : i32
    %c0_i32_0 = arith.constant 0 : i32
    return %c0_i32, %arg1 : i32, i32
  }
  func.func @transform_3(%arg0: i32, %arg1: i32) -> (i32, i32) {
    %c0_i32 = arith.constant 0 : i32
    return %arg0, %arg1 : i32, i32
  }
}

</mosaic_0001>

<bundles_post_ra>
// kernel: dmr_forward.2
= control target key start
LH: loop header
LB: loop body
LE: loop exit
PB: predicated region body
PF: predicated region fallthrough
CT: control target
= control target key end

     0   :  { %15 = vsyncpa [#allocation3], 0  ;;  %s1154_s0 = inlined_call_operand.vmem [shape: bf16[2,64,16], index: 0, kind: input, shape index: {}]   ;;  %s1155_s1 = inlined_call_operand.vmem [shape: bf16[16,3], index: 1, kind: input, shape index: {}]   ;;  %s1156_s2 = inlined_call_operand.vmem [shape: f32[1,3], index: 2, kind: input, shape index: {}]   ;;  %s1157_s3 = inlined_call_operand.vmem [shape: bf16[16,32], index: 3, kind: input, shape index: {}]   ;;  %s1158_s4 = inlined_call_operand.vmem [shape: f32[1,32], index: 4, kind: input, shape index: {}]   ;;  %s1159_s5 = inlined_call_operand.vmem [shape: bf16[32,3], index: 5, kind: input, shape index: {}]   ;;  %s1160_s6 = inlined_call_operand.vmem [shape: f32[1,3], index: 6, kind: input, shape index: {}]   ;;  %s1161_s7 = inlined_call_operand.vmem [shape: f32[2,64,3], index: 7, kind: output, shape index: {0}]   ;;  %s1162_s8 = inlined_call_operand.vmem [shape: f32[2,1,32], index: 8, kind: output, shape index: {1}]   ;;  %s1163_s9 = inlined_call_operand.hbm [shape: f32[2,1,3], index: 9, kind: output, shape index: {2}]  }
   0x1   :  { %17 = vsyncpa [#allocation3 + $0x1], 0  ;;  %s989_s30 = smov 0   ;;  %s991_s10 = smov 0  }
   0x2   :  { %s993_s11 = smov 0   ;;  %s995_s12 = smov 0  }
   0x3 LB: > { %s1010_s13 = sadd.s32 4294967295, %s934_s12   ;;  %s759_s14 = sadd.s32 4294967294, %s934_s12   ;;  %s934_s12 = sphi %s995_s12, %s1169_s12   ;;  %s930_s11 = sphi %s993_s11, %s1168_s11   ;;  %s926_s10 = sphi %s991_s10, %s1167_s10   ;;  %s922_s30 = sphi %s989_s30, %s1166_s30  }
   0x4   : > { %s1014_s15 = sadd.s32 1, %s934_s12   ;;  %s234_s16 = sadd.s32 1, %s930_s11 }
   0x5   : > { %s231_s17 = ssub.s32 %s934_s12, %s1014_s15  ;;  %p244_p0 = scmp.ne.s32.totalorder %s930_s11, %s926_s10 }
   0x6   : > { %p232_p1 = scmp.eq.s32.totalorder %s231_s17, 0  ;;  %p245_p2 = scmp.eq.s32.totalorder %s1010_s13, 1 }
   0x7   : > { %p250_p3 = scmp.ne.s32.totalorder %s926_s10, %s922_s30  ;;  %p251_p4 = scmp.eq.s32.totalorder %s759_s14, 1 }
   0x8   : > { %s1025_s18 = scalar_select %p232_p1, %s930_s11, %s234_s16  }
   0x9   : > { %p1027_p5 = por %p245_p2, %p244_p0  ;;  %p1031_p6 = por %p251_p4, %p250_p3 }
   0xa   : > { %p762_p7 = scmp.ge.s32.totalorder %s934_s12, 1  ;;  %p295_p8 = scmp.lt.s32.totalorder %s934_s12, 3 }
   0xc   : > { %p296_p9 = pnand %p762_p7, %p295_p8 }
   0xd   : > { %v862_v0 = vld [vmem:[%s1157_s3] sm:$0xff] (!%p296_p9)   ;;  %v936_v1 = vmov (!%p296_p9), 0.0   ;;  %p338_p10 = scmp.lt.s32.totalorder (!%p296_p9), %s1010_s13, 1  ;;  %vm937_vm0 = vmmov (!%p296_p9), 0   ;;  %vm395_vm1 = vcmask (!%p296_p9), 130048   ;;  %v867_v39 = vld [vmem:[%s1159_s5 + $0x8] sm:$0xff] (!%p296_p9)  }
   0xe   : > { %299 = sbr.rel (%p296_p9) target bundleno = 505 (0x1f9), region = 48  ;;  %807 = vmatprep.subr.bf16.mxu1 (!%p296_p9), %v936_v1  ;;  %v863_v2 = vld [vmem:[%s1155_s1] sm:$0xff] (!%p296_p9)   ;;  %809 = vmatprep.mubr.msk.bf16.mxu1 (!%p296_p9), %vm937_vm0, %v936_v1  ;;  %vm473_vm2 = vcmask (!%p296_p9), 23552   ;;  %vm567_vm3 = vcmask (!%p296_p9), 253952   ;;  %vm587_vm4 = vcmask (!%p296_p9), 261120   ;;  %s782_s24 = sshll.u32 (!%p296_p9), %s1010_s13, 4 }
   0xf   : > { %808 = vmatpush3.bf16.msra.mxu1 (!%p296_p9), %v862_v0  ;;  %797 = vmatprep.subr.bf16.mxu0 (!%p296_p9), %v863_v2  ;;  %v866_v37 = vld [vmem:[%s1159_s5] sm:$0xff] (!%p296_p9)   ;;  %vm631_vm5 = vcmask (!%p296_p9), 16384   ;;  %s1112_s16 = scalar_lea.hbm (!%p296_p9), %s1163_s9, %s782_s24  ;;  %s938_s17 = smov (!%p296_p9), [#allocation2]  }
  0x10   : > { %813 = vmatprep.subr.bf16.mxu1 (!%p296_p9), %v936_v1  ;;  %798 = vmatpush3.bf16.msra.mxu0 (!%p296_p9), %v863_v2  ;;  %v767_v40 = vld [vmem:[%s1156_s2] ss:$0 sm:$0xff] (!%p296_p9) }
  0x11   : > { %v516_v49 = vld [vmem:[%s1158_s4] sm:$0x1] (!%p296_p9) }
  0x15   : > { %s1046_s25 = scalar_select %p338_p10, %s1010_s13, 1 }
  0x17   : > { %s785_s26 = sshll.u32 %s1046_s25, 5  ;;  %s786_s22 = sshll.u32 %s1046_s25, 6 }
  0x18   : > { %s342_s29 = scalar_lea.vmem %s1154_s0, %s785_s26  ;;  %s1079_s28 = scalar_lea.vmem %s1161_s7, %s786_s22 }
  0x19   : > { %v352_v3 = vld [vmem:[%s342_s29] sm:$0xff]   ;;  %v354_v4 = vld [vmem:[%s342_s29 + $0x8] sm:$0xff]   ;;  %v356_v5 = vld [vmem:[%s342_s29 + $0x10] sm:$0xff]   ;;  %s350_s21 = scalar_lea.vmem %s1162_s8, %s1046_s25  ;;  %s336_s25 = sand.u32 1, %s926_s10  }
  0x1a   : > { %v482_v6 = vunpack.c.l.bf16 %v352_v3  ;;  %v483_v7 = vunpack.c.h.bf16 %v352_v3  ;;  %v484_v8 = vunpack.c.l.bf16 %v354_v4  ;;  %v485_v9 = vunpack.c.h.bf16 %v354_v4  ;;  %v358_v14 = vld [vmem:[%s342_s29 + $0x18] sm:$0xff]   ;;  %799 = vmatprep.mubr.msk.bf16.mxu0 %vm395_vm1, %v352_v3  ;;  %s337_s26 = scalar_lea.vmem [#allocation2], %s336_s25  ;;  %s642_s13 = scalar_lea.sflag [#allocation3], %s336_s25 }
  0x1b   : > { %v486_v10 = vunpack.c.l.bf16 %v356_v5  ;;  %v487_v16 = vunpack.c.h.bf16 %v356_v5  ;;  %v488_v19 = vunpack.c.l.bf16 %v358_v14  ;;  %800 = vmatmul.mubr.msk.bf16.vlgmr.msra.gmra.mrb[0].mxu0 %vm395_vm1, %v354_v4  ;;  %v489_v22 = vunpack.c.h.bf16 %v358_v14  ;;  %s660_s27 = sshll.u32 %s337_s26, 4  ;;  %s1114_s27 = int_to_ptr.vmem [resolvable:$true] %s660_s27 }
  0x1c   : > { %v490_v11 = vsel %vm395_vm1, %v482_v6, 0.0  ;;  %v491_v12 = vsel %vm395_vm1, %v483_v7, 0.0  ;;  %v493_v13 = vsel %vm395_vm1, %v484_v8, 0.0  ;;  %v495_v17 = vsel %vm395_vm1, %v485_v9, 0.0  ;;  %803 = vmatprep.mubr.msk.bf16.mxu0 %vm395_vm1, %v356_v5 }
  0x1d   : > { %v492_v15 = vadd.f32 %v491_v12, %v490_v11  ;;  %v497_v20 = vsel %vm395_vm1, %v486_v10, 0.0  ;;  %v499_v23 = vsel %vm395_vm1, %v487_v16, 0.0  ;;  %v501_v25 = vsel %vm395_vm1, %v488_v19, 0.0 }
  0x1e   : > { %v503_v27 = vsel %vm395_vm1, %v489_v22, 0.0 }
  0x1f   : > { %v494_v18 = vadd.f32 %v493_v13, %v492_v15 }
  0x21   : > { %v496_v21 = vadd.f32 %v495_v17, %v494_v18 }
  0x23   : > { %v498_v24 = vadd.f32 %v497_v20, %v496_v21  ;;  %804 = vmatmul.mubr.msk.bf16.gmra.mrb[4].mxu0 %vm395_vm1, %v358_v14 }
  0x25   : > { %v500_v26 = vadd.f32 %v499_v23, %v498_v24 }
  0x27   : > { %v502_v28 = vadd.f32 %v501_v25, %v500_v26 }
  0x29   : > { %v504_v29 = vadd.f32 %v503_v27, %v502_v28 }
  0x2b   : > { %v505_v30 = vrot.slane %v504_v29, 4 }
  0x2d   : > { %v506_v31 = vadd.f32 %v505_v30, %v504_v29 }
  0x2f   : > { %v507_v32 = vrot.slane %v506_v31, 2 }
  0x31   : > { %v508_v33 = vadd.f32 %v507_v32, %v506_v31 }
  0x33   : > { %v509_v34 = vrot.slane %v508_v33, 1 }
  0x35   : > { %v510_v35 = vadd.f32 %v509_v34, %v508_v33 }
  0x37   : > { %v512_v36 = vmul.f32 0.015625, %v510_v35 }
  0x39   : > { %v513_v38 = vpack.c.bf16 %v512_v36, %v512_v36 }
  0x3b   : > { %810 = vmatmul.mubr.msk.bf16.vlgmr.msra.gmra.mrb[0].mxu1 %vm395_vm1, %v513_v38 }
  0x3c   : > { %814 = vmatpush3.bf16.msra.mxu1 %v866_v37  ;;  %817 = vmatprep.mubr.msk.bf16.mxu1 %vm937_vm0, %v936_v1 }
  0x3d   : > { %815 = vmatprep.subr.bf16.mxu1 %v936_v1  ;;  %v574_v1 = vld [vmem:[%s1160_s6] sm:$0x1] }
  0x40   : > { %816 = vmatpush3.bf16.msra.mxu1 %v867_v39 }
  0xee   : > { %v801_v41 = vpop.f32.mrb[0].mxu0 }
  0xef   : > { %v451_v42 = vadd.f32 %v801_v41, %v767_v40  ;;  %v442_v43 = vpop.f32.mrb[1].mxu0 }
  0xf0   : > { %v443_v44 = vadd.f32 %v767_v40, %v442_v43  ;;  %v802_v45 = vpop.f32.mrb[2].mxu0 }
  0xf1   : > { %476 = vst.msk [vmem:[%s1079_s28 + $0x10] sm:$0xff] %vm473_vm2, %v451_v42  ;;  %v454_v46 = vadd.f32 %v802_v45, %v767_v40  ;;  %v445_v47 = vpop.f32.mrb[3].mxu0 }
  0xf2   : > { %474 = vst.msk [vmem:[%s1079_s28] sm:$0xff] %vm473_vm2, %v443_v44  ;;  %v446_v48 = vadd.f32 %v767_v40, %v445_v47 }
  0xf3   : > { %477 = vst.msk [vmem:[%s1079_s28 + $0x18] sm:$0xff] %vm473_vm2, %v454_v46 }
  0xf4   : > { %475 = vst.msk [vmem:[%s1079_s28 + $0x8] sm:$0xff] %vm473_vm2, %v446_v48 }
  0xf6   : > { %v805_v57 = vpop.f32.mrb[4].mxu0 }
  0xf7   : > { %v467_v58 = vadd.f32 %v805_v57, %v767_v40  ;;  %v458_v59 = vpop.f32.mrb[5].mxu0 }
  0xf8   : > { %v459_v60 = vadd.f32 %v767_v40, %v458_v59  ;;  %v806_v61 = vpop.f32.mrb[6].mxu0 }
  0xf9   : > { %480 = vst.msk [vmem:[%s1079_s28 + $0x30] sm:$0xff] %vm473_vm2, %v467_v58  ;;  %v470_v62 = vadd.f32 %v806_v61, %v767_v40  ;;  %v461_v63 = vpop.f32.mrb[7].mxu0 }
  0xfa   : > { %478 = vst.msk [vmem:[%s1079_s28 + $0x20] sm:$0xff] %vm473_vm2, %v459_v60  ;;  %v462_v0 = vadd.f32 %v767_v40, %v461_v63 }
  0xfb   : > { %481 = vst.msk [vmem:[%s1079_s28 + $0x38] sm:$0xff] %vm473_vm2, %v470_v62 }
  0xfc   : > { %479 = vst.msk [vmem:[%s1079_s28 + $0x28] sm:$0xff] %vm473_vm2, %v462_v0  ;;  %s872_s28 = scalar_lea.vmem %s1114_s27, 16 }
  0xfd   : > { %p873_p11 = scmp.ne.s32.totalorder %s1114_s27, %s872_s28 }
  0xff   : > { %p874_p12 = pnand %p873_p11, %p1027_p5 }
 0x101   : > { %p875_p13 = pneg %p874_p12 }
 0x10e   : > { %v560_v50 = vpop.f32.mrb[0].mxu1 }
 0x10f   : > { %v561_v51 = vadd.f32 %v560_v50, %v516_v49  ;;  %v811_v52 = vpop.f32.mrb[1].mxu1 }
 0x110   : > { %v563_v53 = vpop.f32.mrb[2].mxu1 }
 0x111   : > { %v566_v54 = vmax.f32 %v561_v51, 0.0  ;;  %v812_v55 = vpop.f32.mrb[3].mxu1 }
 0x113   : > { %568 = vst.msk [vmem:[%s350_s21] sm:$0x1] %vm567_vm3, %v566_v54  ;;  %v569_v56 = vpack.c.bf16 %v566_v54, %v566_v54  ;;  %s876_s21 = sshll.u32 %s938_s17, 4  ;;  %s877_s21 = int_to_ptr.vmem [resolvable:$false] %s876_s21 }
 0x114   : > { %s878_s22 = scalar_lea.vmem %s877_s21, 32  ;;  %p879_p0 = scmp.lt.s32.totalorder %s1114_s27, %s877_s21 }
 0x115   : > { %818 = vmatmul.mubr.msk.bf16.vlgmr.msra.gmra.mrb[4].mxu1 %vm587_vm4, %v569_v56  ;;  %p880_p1 = scmp.lt.s32.totalorder %s878_s22, %s872_s28 }
 0x117   : > { %p881_p2 = por %p880_p1, %p879_p0 }
 0x119   : > { %p882_p3 = pnand %p881_p2, %p875_p13 }
 0x1e8   : > { %v625_v2 = vpop.f32.mrb[4].mxu1 }
 0x1e9   : > { %v626_v3 = vadd.f32 %v625_v2, %v574_v1  ;;  %v819_v4 = vpop.f32.mrb[5].mxu1 }
 0x1ea   : > { %v628_v5 = vpop.f32.mrb[6].mxu1 }
 0x1eb   : > { %v820_v6 = vpop.f32.mrb[7].mxu1  ;;  %632 = vst.msk [vmem:[%s337_s26] sm:$0x1] %vm631_vm5, %v626_v3 }
 0x1ec   : > { %885 = shalt.err (!%p882_p3)
}
 0x1ed   : > { %s886_s25 = scalar_lea.hbm %s1112_s16, 16  ;;  %s890_s26 = scalar_lea.hbm %s1163_s9, 32 }
 0x1ee   : > { %p887_p4 = scmp.ne.s32.totalorder %s1112_s16, %s886_s25  ;;  %p891_p9 = scmp.lt.u32.totalorder %s1112_s16, %s1163_s9 }
 0x1ef   : > { %p892_p10 = scmp.lt.u32.totalorder %s890_s26, %s886_s25  ;;  %p894_p12 = scmp.lt.u32.totalorder %s886_s25, %s1112_s16 }
 0x1f0   : > { %p888_p7 = pnand %p887_p4, %p1027_p5 }
 0x1f1   : > { %p893_p11 = por %p892_p10, %p891_p9 }
 0x1f2   : > { %p889_p8 = pneg %p888_p7 }
 0x1f3   : > { %p895_p13 = por %p894_p12, %p893_p11 }
 0x1f5   : > { %p896_p0 = pnand %p895_p13, %p889_p8 }
 0x1f7   : > { %899 = shalt.err (!%p896_p0)
}
 0x1f8   : > { %821 = dma.vmem_to_hbm [thread:$0]  (%p1027_p5), %s1114_s27, 16, %s1112_s16, %s642_s13  }
 0x1f9 PF: > { %p827_p1 = scmp.ge.s32.totalorder %s934_s12, 2  ;;  %s686_s28 = sand.u32 1, %s922_s30  }
 0x1fa   : > { %s687_s17 = scalar_lea.sflag [#allocation3], %s686_s28 }
 0x1fb   : > { %p824_p2 = pnand %p827_p1, %p1031_p6 }
 0x1fd   : > { %917 = dma.done.wait (!%p824_p2), %s687_s17, 16  }
 0x1fe   : > { %919 = vsyncadd (!%p824_p2), %s687_s17, 4294967280  ;;  %p20_p3 = scmp.ge.s32.totalorder %s1014_s15, 4   ;;  %s1166_s30 = smov %s926_s10 }
 0x1ff   : > { %s1167_s10 = smov %s930_s11  ;;  %s1168_s11 = smov %s1025_s18 }
 0x200   : > { %s1169_s12 = smov %s1014_s15  ;;  %22 = sbr.rel (!%p20_p3) target bundleno = 3 (0x3), region = 107 }
 0x207   :  { %691 = vsyncpa [#allocation3], 1 }
 0x208   :  { %693 = vsyncpa [#allocation3 + $0x1], 1 }

// kernel: dmr_forward.3
= control target key start
LH: loop header
LB: loop body
LE: loop exit
PB: predicated region body
PF: predicated region fallthrough
CT: control target
= control target key end

     0   :  { %s4174_s12 = smov 0   ;;  %s4176_s13 = smov 0   ;;  %s5203_s0 = inlined_call_operand.vmem [shape: bf16[2,1248], index: 0, kind: input, shape index: {}]   ;;  %s5204_s1 = inlined_call_operand.vmem [shape: bf16[1248,768], index: 1, kind: input, shape index: {}]   ;;  %s5205_s2 = inlined_call_operand.vmem [shape: f32[1,768], index: 2, kind: input, shape index: {}]   ;;  %s5206_s3 = inlined_call_operand.vmem [shape: f32[2,768], index: 3, kind: output, shape index: {}]  }
   0x1   :  { %s4178_s14 = smov 0   ;;  %s4180_s15 = smov 0  }
   0x2   :  { %s4182_s16 = smov 0  }
   0x3 LB: > { %s22_s17 = sadd.s32 1, %s4145_s15  ;;  %p65_p1 = scmp.ne.s32.totalorder %s4137_s13, %s4133_s12  ;;  %s4149_s16 = sphi %s4182_s16, %s13_s16   ;;  %s4145_s15 = sphi %s4180_s15, %s5210_s15   ;;  %s4141_s14 = sphi %s4178_s14, %s5209_s14   ;;  %s4137_s13 = sphi %s4176_s13, %s5208_s13   ;;  %s4133_s12 = sphi %s4174_s12, %s5207_s12  }
   0x4   : > { %p23_p0 = scmp.ge.s32.totalorder %s22_s17, 2  ;;  %p66_p2 = scmp.eq.s32.totalorder %s4149_s16, 0 }
   0x5   : > { %s58_s19 = sadd.s32 1, %s4137_s13  ;;  %p3093_p5 = scmp.ge.s32.totalorder %s4149_s16, 2 }
   0x6   : > { %s5212_s17 = smov (%p23_p0, %s22_s17), 0  ;;  %p67_p3 = por %p66_p2, %p65_p1 }
   0x7   : > { %s55_s18 = ssub.s32 %s4145_s15, %s5212_s17  ;;  %152 = sbr.rel (%p3093_p5) target bundleno = 201 (0xc9), region = 20 }
   0x8   : > { %p56_p4 = scmp.eq.s32.totalorder %s55_s18, 0 }
   0xa   : > { %s4209_s20 = scalar_select %p56_p4, %s4137_s13, %s58_s19  }
   0xe   : > { %155 = sbr.rel (!%p67_p3) target bundleno = 201 (0xc9), region = 24  ;;  %s157_s21 = sand.u32 (%p67_p3), 1, %s4137_s13  }
   0xf   : > { %s3648_s22 = smul.u32 (%p67_p3), 12, %s4145_s15 }
  0x10   : > { %s3753_s23 = smul.u32 (%p67_p3), 1872, %s157_s21 }
  0x11   : > { %s4217_s26 = scalar_lea.vmem (%p67_p3), %s5204_s1, %s3648_s22 }
  0x12   : > { %v177_v0 = vld [vmem:[%s4217_s26] sm:$0xff] (%p67_p3)  ;;  %v179_v1 = vld [vmem:[%s4217_s26 + $0x18] sm:$0xff] (%p67_p3)  ;;  %v181_v2 = vld [vmem:[%s4217_s26 + $0x30] sm:$0xff] (%p67_p3)  ;;  %s4222_s27 = scalar_lea.vmem (%p67_p3), [#allocation2], %s3753_s23 }
  0x13   : > { %178 = vst [vmem:[%s4222_s27] sm:$0xff] (%p67_p3), %v177_v0  ;;  %180 = vst [vmem:[%s4222_s27 + $0xc] sm:$0xff] (%p67_p3), %v179_v1  ;;  %v183_v3 = vld [vmem:[%s4217_s26 + $0x48] sm:$0xff] (%p67_p3)  ;;  %v185_v4 = vld [vmem:[%s4217_s26 + $0x60] sm:$0xff] (%p67_p3) }
  0x14   : > { %182 = vst [vmem:[%s4222_s27 + $0x18] sm:$0xff] (%p67_p3), %v181_v2  ;;  %v187_v5 = vld [vmem:[%s4217_s26 + $0x78] sm:$0xff] (%p67_p3)  ;;  %184 = vst [vmem:[%s4222_s27 + $0x24] sm:$0xff] (%p67_p3), %v183_v3  ;;  %v189_v6 = vld [vmem:[%s4217_s26 + $0x90] sm:$0xff] (%p67_p3) }
  0x15   : > { %186 = vst [vmem:[%s4222_s27 + $0x30] sm:$0xff] %v185_v4  ;;  %188 = vst [vmem:[%s4222_s27 + $0x3c] sm:$0xff] %v187_v5  ;;  %v191_v7 = vld [vmem:[%s4217_s26 + $0xa8] sm:$0xff]  ;;  %v193_v8 = vld [vmem:[%s4217_s26 + $0xc0] sm:$0xff] }
  0x16   : > { %190 = vst [vmem:[%s4222_s27 + $0x48] sm:$0xff] %v189_v6  ;;  %192 = vst [vmem:[%s4222_s27 + $0x54] sm:$0xff] %v191_v7  ;;  %v195_v9 = vld [vmem:[%s4217_s26 + $0xd8] sm:$0xff]  ;;  %v197_v10 = vld [vmem:[%s4217_s26 + $0xf0] sm:$0xff] }
  0x17   : > { %194 = vst [vmem:[%s4222_s27 + $0x60] sm:$0xff] %v193_v8  ;;  %v199_v11 = vld [vmem:[%s4217_s26 + $0x108] sm:$0xff]  ;;  %196 = vst [vmem:[%s4222_s27 + $0x6c] sm:$0xff] %v195_v9  ;;  %v201_v12 = vld [vmem:[%s4217_s26 + $0x120] sm:$0xff] }
  0x18   : > { %198 = vst [vmem:[%s4222_s27 + $0x78] sm:$0xff] %v197_v10  ;;  %200 = vst [vmem:[%s4222_s27 + $0x84] sm:$0xff] %v199_v11  ;;  %v203_v13 = vld [vmem:[%s4217_s26 + $0x138] sm:$0xff]  ;;  %v205_v14 = vld [vmem:[%s4217_s26 + $0x150] sm:$0xff] }
  0x19   : > { %202 = vst [vmem:[%s4222_s27 + $0x90] sm:$0xff] %v201_v12  ;;  %204 = vst [vmem:[%s4222_s27 + $0x9c] sm:$0xff] %v203_v13  ;;  %v207_v15 = vld [vmem:[%s4217_s26 + $0x168] sm:$0xff]  ;;  %v209_v16 = vld [vmem:[%s4217_s26 + $0x180] sm:$0xff] }
  0x1a   : > { %206 = vst [vmem:[%s4222_s27 + $0xa8] sm:$0xff] %v205_v14  ;;  %v211_v17 = vld [vmem:[%s4217_s26 + $0x198] sm:$0xff]  ;;  %208 = vst [vmem:[%s4222_s27 + $0xb4] sm:$0xff] %v207_v15  ;;  %v213_v18 = vld [vmem:[%s4217_s26 + $0x1b0] sm:$0xff] }
  0x1b   : > { %210 = vst [vmem:[%s4222_s27 + $0xc0] sm:$0xff] %v209_v16  ;;  %212 = vst [vmem:[%s4222_s27 + $0xcc] sm:$0xff] %v211_v17  ;;  %v215_v19 = vld [vmem:[%s4217_s26 + $0x1c8] sm:$0xff]  ;;  %v217_v20 = vld [vmem:[%s4217_s26 + $0x1e0] sm:$0xff] }
  0x1c   : > { %214 = vst [vmem:[%s4222_s27 + $0xd8] sm:$0xff] %v213_v18  ;;  %216 = vst [vmem:[%s4222_s27 + $0xe4] sm:$0xff] %v215_v19  ;;  %v219_v21 = vld [vmem:[%s4217_s26 + $0x1f8] sm:$0xff]  ;;  %v221_v22 = vld [vmem:[%s4217_s26 + $0x210] sm:$0xff] }
  0x1d   : > { %218 = vst [vmem:[%s4222_s27 + $0xf0] sm:$0xff] %v217_v20  ;;  %v223_v23 = vld [vmem:[%s4217_s26 + $0x228] sm:$0xff]  ;;  %220 = vst [vmem:[%s4222_s27 + $0xfc] sm:$0xff] %v219_v21  ;;  %v225_v24 = vld [vmem:[%s4217_s26 + $0x240] sm:$0xff] }
  0x1e   : > { %222 = vst [vmem:[%s4222_s27 + $0x108] sm:$0xff] %v221_v22  ;;  %224 = vst [vmem:[%s4222_s27 + $0x114] sm:$0xff] %v223_v23  ;;  %v227_v25 = vld [vmem:[%s4217_s26 + $0x258] sm:$0xff]  ;;  %v229_v26 = vld [vmem:[%s4217_s26 + $0x270] sm:$0xff] }
  0x1f   : > { %226 = vst [vmem:[%s4222_s27 + $0x120] sm:$0xff] %v225_v24  ;;  %228 = vst [vmem:[%s4222_s27 + $0x12c] sm:$0xff] %v227_v25  ;;  %v231_v27 = vld [vmem:[%s4217_s26 + $0x288] sm:$0xff]  ;;  %v233_v28 = vld [vmem:[%s4217_s26 + $0x2a0] sm:$0xff] }
  0x20   : > { %230 = vst [vmem:[%s4222_s27 + $0x138] sm:$0xff] %v229_v26  ;;  %v235_v29 = vld [vmem:[%s4217_s26 + $0x2b8] sm:$0xff]  ;;  %232 = vst [vmem:[%s4222_s27 + $0x144] sm:$0xff] %v231_v27  ;;  %v237_v30 = vld [vmem:[%s4217_s26 + $0x2d0] sm:$0xff] }
  0x21   : > { %234 = vst [vmem:[%s4222_s27 + $0x150] sm:$0xff] %v233_v28  ;;  %236 = vst [vmem:[%s4222_s27 + $0x15c] sm:$0xff] %v235_v29  ;;  %v239_v31 = vld [vmem:[%s4217_s26 + $0x2e8] sm:$0xff]  ;;  %v241_v32 = vld [vmem:[%s4217_s26 + $0x300] sm:$0xff] }
  0x22   : > { %238 = vst [vmem:[%s4222_s27 + $0x168] sm:$0xff] %v237_v30  ;;  %240 = vst [vmem:[%s4222_s27 + $0x174] sm:$0xff] %v239_v31  ;;  %v243_v33 = vld [vmem:[%s4217_s26 + $0x318] sm:$0xff]  ;;  %v245_v34 = vld [vmem:[%s4217_s26 + $0x330] sm:$0xff] }
  0x23   : > { %242 = vst [vmem:[%s4222_s27 + $0x180] sm:$0xff] %v241_v32  ;;  %v247_v35 = vld [vmem:[%s4217_s26 + $0x348] sm:$0xff]  ;;  %244 = vst [vmem:[%s4222_s27 + $0x18c] sm:$0xff] %v243_v33  ;;  %v249_v36 = vld [vmem:[%s4217_s26 + $0x360] sm:$0xff] }
  0x24   : > { %246 = vst [vmem:[%s4222_s27 + $0x198] sm:$0xff] %v245_v34  ;;  %248 = vst [vmem:[%s4222_s27 + $0x1a4] sm:$0xff] %v247_v35  ;;  %v251_v37 = vld [vmem:[%s4217_s26 + $0x378] sm:$0xff]  ;;  %v253_v38 = vld [vmem:[%s4217_s26 + $0x390] sm:$0xff] }
  0x25   : > { %250 = vst [vmem:[%s4222_s27 + $0x1b0] sm:$0xff] %v249_v36  ;;  %252 = vst [vmem:[%s4222_s27 + $0x1bc] sm:$0xff] %v251_v37  ;;  %v255_v39 = vld [vmem:[%s4217_s26 + $0x3a8] sm:$0xff]  ;;  %v257_v40 = vld [vmem:[%s4217_s26 + $0x3c0] sm:$0xff] }
  0x26   : > { %254 = vst [vmem:[%s4222_s27 + $0x1c8] sm:$0xff] %v253_v38  ;;  %v259_v41 = vld [vmem:[%s4217_s26 + $0x3d8] sm:$0xff]  ;;  %256 = vst [vmem:[%s4222_s27 + $0x1d4] sm:$0xff] %v255_v39  ;;  %v261_v42 = vld [vmem:[%s4217_s26 + $0x3f0] sm:$0xff] }
  0x27   : > { %258 = vst [vmem:[%s4222_s27 + $0x1e0] sm:$0xff] %v257_v40  ;;  %260 = vst [vmem:[%s4222_s27 + $0x1ec] sm:$0xff] %v259_v41  ;;  %v263_v43 = vld [vmem:[%s4217_s26 + $0x408] sm:$0xff]  ;;  %v265_v44 = vld [vmem:[%s4217_s26 + $0x420] sm:$0xff] }
  0x28   : > { %262 = vst [vmem:[%s4222_s27 + $0x1f8] sm:$0xff] %v261_v42  ;;  %264 = vst [vmem:[%s4222_s27 + $0x204] sm:$0xff] %v263_v43  ;;  %v267_v45 = vld [vmem:[%s4217_s26 + $0x438] sm:$0xff]  ;;  %v269_v46 = vld [vmem:[%s4217_s26 + $0x450] sm:$0xff] }
  0x29   : > { %266 = vst [vmem:[%s4222_s27 + $0x210] sm:$0xff] %v265_v44  ;;  %v271_v47 = vld [vmem:[%s4217_s26 + $0x468] sm:$0xff]  ;;  %268 = vst [vmem:[%s4222_s27 + $0x21c] sm:$0xff] %v267_v45  ;;  %v273_v48 = vld [vmem:[%s4217_s26 + $0x480] sm:$0xff] }
  0x2a   : > { %270 = vst [vmem:[%s4222_s27 + $0x228] sm:$0xff] %v269_v46  ;;  %272 = vst [vmem:[%s4222_s27 + $0x234] sm:$0xff] %v271_v47  ;;  %v275_v49 = vld [vmem:[%s4217_s26 + $0x498] sm:$0xff]  ;;  %v277_v50 = vld [vmem:[%s4217_s26 + $0x4b0] sm:$0xff] }
  0x2b   : > { %274 = vst [vmem:[%s4222_s27 + $0x240] sm:$0xff] %v273_v48  ;;  %276 = vst [vmem:[%s4222_s27 + $0x24c] sm:$0xff] %v275_v49  ;;  %v279_v51 = vld [vmem:[%s4217_s26 + $0x4c8] sm:$0xff]  ;;  %v281_v52 = vld [vmem:[%s4217_s26 + $0x4e0] sm:$0xff] }
  0x2c   : > { %278 = vst [vmem:[%s4222_s27 + $0x258] sm:$0xff] %v277_v50  ;;  %v283_v53 = vld [vmem:[%s4217_s26 + $0x4f8] sm:$0xff]  ;;  %280 = vst [vmem:[%s4222_s27 + $0x264] sm:$0xff] %v279_v51  ;;  %v285_v54 = vld [vmem:[%s4217_s26 + $0x510] sm:$0xff] }
  0x2d   : > { %282 = vst [vmem:[%s4222_s27 + $0x270] sm:$0xff] %v281_v52  ;;  %284 = vst [vmem:[%s4222_s27 + $0x27c] sm:$0xff] %v283_v53  ;;  %v287_v55 = vld [vmem:[%s4217_s26 + $0x528] sm:$0xff]  ;;  %v289_v56 = vld [vmem:[%s4217_s26 + $0x540] sm:$0xff] }
  0x2e   : > { %286 = vst [vmem:[%s4222_s27 + $0x288] sm:$0xff] %v285_v54  ;;  %288 = vst [vmem:[%s4222_s27 + $0x294] sm:$0xff] %v287_v55  ;;  %v291_v57 = vld [vmem:[%s4217_s26 + $0x558] sm:$0xff]  ;;  %v293_v58 = vld [vmem:[%s4217_s26 + $0x570] sm:$0xff] }
  0x2f   : > { %290 = vst [vmem:[%s4222_s27 + $0x2a0] sm:$0xff] %v289_v56  ;;  %v295_v59 = vld [vmem:[%s4217_s26 + $0x588] sm:$0xff]  ;;  %292 = vst [vmem:[%s4222_s27 + $0x2ac] sm:$0xff] %v291_v57  ;;  %v297_v60 = vld [vmem:[%s4217_s26 + $0x5a0] sm:$0xff] }
  0x30   : > { %294 = vst [vmem:[%s4222_s27 + $0x2b8] sm:$0xff] %v293_v58  ;;  %296 = vst [vmem:[%s4222_s27 + $0x2c4] sm:$0xff] %v295_v59  ;;  %v299_v61 = vld [vmem:[%s4217_s26 + $0x5b8] sm:$0xff]  ;;  %v301_v62 = vld [vmem:[%s4217_s26 + $0x5d0] sm:$0xff] }
  0x31   : > { %298 = vst [vmem:[%s4222_s27 + $0x2d0] sm:$0xff] %v297_v60  ;;  %300 = vst [vmem:[%s4222_s27 + $0x2dc] sm:$0xff] %v299_v61  ;;  %v303_v63 = vld [vmem:[%s4217_s26 + $0x5e8] sm:$0xff]  ;;  %v305_v0 = vld [vmem:[%s4217_s26 + $0x600] sm:$0xff] }
  0x32   : > { %302 = vst [vmem:[%s4222_s27 + $0x2e8] sm:$0xff] %v301_v62  ;;  %v307_v1 = vld [vmem:[%s4217_s26 + $0x618] sm:$0xff]  ;;  %304 = vst [vmem:[%s4222_s27 + $0x2f4] sm:$0xff] %v303_v63  ;;  %v309_v2 = vld [vmem:[%s4217_s26 + $0x630] sm:$0xff] }
  0x33   : > { %306 = vst [vmem:[%s4222_s27 + $0x300] sm:$0xff] %v305_v0  ;;  %308 = vst [vmem:[%s4222_s27 + $0x30c] sm:$0xff] %v307_v1  ;;  %v311_v3 = vld [vmem:[%s4217_s26 + $0x648] sm:$0xff]  ;;  %v313_v4 = vld [vmem:[%s4217_s26 + $0x660] sm:$0xff] }
  0x34   : > { %310 = vst [vmem:[%s4222_s27 + $0x318] sm:$0xff] %v309_v2  ;;  %312 = vst [vmem:[%s4222_s27 + $0x324] sm:$0xff] %v311_v3  ;;  %v315_v5 = vld [vmem:[%s4217_s26 + $0x678] sm:$0xff]  ;;  %v317_v6 = vld [vmem:[%s4217_s26 + $0x690] sm:$0xff] }
  0x35   : > { %314 = vst [vmem:[%s4222_s27 + $0x330] sm:$0xff] %v313_v4  ;;  %v319_v7 = vld [vmem:[%s4217_s26 + $0x6a8] sm:$0xff]  ;;  %316 = vst [vmem:[%s4222_s27 + $0x33c] sm:$0xff] %v315_v5  ;;  %v321_v8 = vld [vmem:[%s4217_s26 + $0x6c0] sm:$0xff] }
  0x36   : > { %318 = vst [vmem:[%s4222_s27 + $0x348] sm:$0xff] %v317_v6  ;;  %320 = vst [vmem:[%s4222_s27 + $0x354] sm:$0xff] %v319_v7  ;;  %v323_v9 = vld [vmem:[%s4217_s26 + $0x6d8] sm:$0xff]  ;;  %v325_v10 = vld [vmem:[%s4217_s26 + $0x6f0] sm:$0xff] }
  0x37   : > { %322 = vst [vmem:[%s4222_s27 + $0x360] sm:$0xff] %v321_v8  ;;  %324 = vst [vmem:[%s4222_s27 + $0x36c] sm:$0xff] %v323_v9  ;;  %v327_v11 = vld [vmem:[%s4217_s26 + $0x708] sm:$0xff]  ;;  %v329_v12 = vld [vmem:[%s4217_s26 + $0x720] sm:$0xff] }
  0x38   : > { %326 = vst [vmem:[%s4222_s27 + $0x378] sm:$0xff] %v325_v10  ;;  %v331_v13 = vld [vmem:[%s4217_s26 + $0x738] sm:$0xff]  ;;  %328 = vst [vmem:[%s4222_s27 + $0x384] sm:$0xff] %v327_v11  ;;  %v333_v14 = vld [vmem:[%s4217_s26 + $0x750] sm:$0xff] }
  0x39   : > { %330 = vst [vmem:[%s4222_s27 + $0x390] sm:$0xff] %v329_v12  ;;  %332 = vst [vmem:[%s4222_s27 + $0x39c] sm:$0xff] %v331_v13  ;;  %v335_v15 = vld [vmem:[%s4217_s26 + $0x768] sm:$0xff]  ;;  %v337_v16 = vld [vmem:[%s4217_s26 + $0x780] sm:$0xff] }
  0x3a   : > { %334 = vst [vmem:[%s4222_s27 + $0x3a8] sm:$0xff] %v333_v14  ;;  %336 = vst [vmem:[%s4222_s27 + $0x3b4] sm:$0xff] %v335_v15  ;;  %v339_v17 = vld [vmem:[%s4217_s26 + $0x798] sm:$0xff]  ;;  %v341_v18 = vld [vmem:[%s4217_s26 + $0x7b0] sm:$0xff] }
  0x3b   : > { %338 = vst [vmem:[%s4222_s27 + $0x3c0] sm:$0xff] %v337_v16  ;;  %v343_v19 = vld [vmem:[%s4217_s26 + $0x7c8] sm:$0xff]  ;;  %340 = vst [vmem:[%s4222_s27 + $0x3cc] sm:$0xff] %v339_v17  ;;  %v345_v20 = vld [vmem:[%s4217_s26 + $0x7e0] sm:$0xff] }
  0x3c   : > { %342 = vst [vmem:[%s4222_s27 + $0x3d8] sm:$0xff] %v341_v18  ;;  %344 = vst [vmem:[%s4222_s27 + $0x3e4] sm:$0xff] %v343_v19  ;;  %v347_v21 = vld [vmem:[%s4217_s26 + $0x7f8] sm:$0xff]  ;;  %v349_v22 = vld [vmem:[%s4217_s26 + $0x810] sm:$0xff] }
  0x3d   : > { %346 = vst [vmem:[%s4222_s27 + $0x3f0] sm:$0xff] %v345_v20  ;;  %348 = vst [vmem:[%s4222_s27 + $0x3fc] sm:$0xff] %v347_v21  ;;  %v351_v23 = vld [vmem:[%s4217_s26 + $0x828] sm:$0xff]  ;;  %v353_v24 = vld [vmem:[%s4217_s26 + $0x840] sm:$0xff] }
  0x3e   : > { %350 = vst [vmem:[%s4222_s27 + $0x408] sm:$0xff] %v349_v22  ;;  %v355_v25 = vld [vmem:[%s4217_s26 + $0x858] sm:$0xff]  ;;  %352 = vst [vmem:[%s4222_s27 + $0x414] sm:$0xff] %v351_v23  ;;  %v357_v26 = vld [vmem:[%s4217_s26 + $0x870] sm:$0xff] }
  0x3f   : > { %354 = vst [vmem:[%s4222_s27 + $0x420] sm:$0xff] %v353_v24  ;;  %356 = vst [vmem:[%s4222_s27 + $0x42c] sm:$0xff] %v355_v25  ;;  %v359_v27 = vld [vmem:[%s4217_s26 + $0x888] sm:$0xff]  ;;  %v361_v28 = vld [vmem:[%s4217_s26 + $0x8a0] sm:$0xff] }
  0x40   : > { %358 = vst [vmem:[%s4222_s27 + $0x438] sm:$0xff] %v357_v26  ;;  %360 = vst [vmem:[%s4222_s27 + $0x444] sm:$0xff] %v359_v27  ;;  %v363_v29 = vld [vmem:[%s4217_s26 + $0x8b8] sm:$0xff]  ;;  %v365_v30 = vld [vmem:[%s4217_s26 + $0x8d0] sm:$0xff] }
  0x41   : > { %362 = vst [vmem:[%s4222_s27 + $0x450] sm:$0xff] %v361_v28  ;;  %v367_v31 = vld [vmem:[%s4217_s26 + $0x8e8] sm:$0xff]  ;;  %364 = vst [vmem:[%s4222_s27 + $0x45c] sm:$0xff] %v363_v29  ;;  %v369_v32 = vld [vmem:[%s4217_s26 + $0x900] sm:$0xff] }
  0x42   : > { %366 = vst [vmem:[%s4222_s27 + $0x468] sm:$0xff] %v365_v30  ;;  %368 = vst [vmem:[%s4222_s27 + $0x474] sm:$0xff] %v367_v31  ;;  %v371_v33 = vld [vmem:[%s4217_s26 + $0x918] sm:$0xff]  ;;  %v373_v34 = vld [vmem:[%s4217_s26 + $0x930] sm:$0xff] }
  0x43   : > { %370 = vst [vmem:[%s4222_s27 + $0x480] sm:$0xff] %v369_v32  ;;  %372 = vst [vmem:[%s4222_s27 + $0x48c] sm:$0xff] %v371_v33  ;;  %v375_v35 = vld [vmem:[%s4217_s26 + $0x948] sm:$0xff]  ;;  %v377_v36 = vld [vmem:[%s4217_s26 + $0x960] sm:$0xff] }
  0x44   : > { %374 = vst [vmem:[%s4222_s27 + $0x498] sm:$0xff] %v373_v34  ;;  %v379_v37 = vld [vmem:[%s4217_s26 + $0x978] sm:$0xff]  ;;  %376 = vst [vmem:[%s4222_s27 + $0x4a4] sm:$0xff] %v375_v35  ;;  %v381_v38 = vld [vmem:[%s4217_s26 + $0x990] sm:$0xff] }
  0x45   : > { %378 = vst [vmem:[%s4222_s27 + $0x4b0] sm:$0xff] %v377_v36  ;;  %380 = vst [vmem:[%s4222_s27 + $0x4bc] sm:$0xff] %v379_v37  ;;  %v383_v39 = vld [vmem:[%s4217_s26 + $0x9a8] sm:$0xff]  ;;  %v385_v40 = vld [vmem:[%s4217_s26 + $0x9c0] sm:$0xff] }
  0x46   : > { %382 = vst [vmem:[%s4222_s27 + $0x4c8] sm:$0xff] %v381_v38  ;;  %384 = vst [vmem:[%s4222_s27 + $0x4d4] sm:$0xff] %v383_v39  ;;  %v387_v41 = vld [vmem:[%s4217_s26 + $0x9d8] sm:$0xff]  ;;  %v389_v42 = vld [vmem:[%s4217_s26 + $0x9f0] sm:$0xff] }
  0x47   : > { %386 = vst [vmem:[%s4222_s27 + $0x4e0] sm:$0xff] %v385_v40  ;;  %v391_v43 = vld [vmem:[%s4217_s26 + $0xa08] sm:$0xff]  ;;  %388 = vst [vmem:[%s4222_s27 + $0x4ec] sm:$0xff] %v387_v41  ;;  %v393_v44 = vld [vmem:[%s4217_s26 + $0xa20] sm:$0xff] }
  0x48   : > { %390 = vst [vmem:[%s4222_s27 + $0x4f8] sm:$0xff] %v389_v42  ;;  %392 = vst [vmem:[%s4222_s27 + $0x504] sm:$0xff] %v391_v43  ;;  %v395_v45 = vld [vmem:[%s4217_s26 + $0xa38] sm:$0xff]  ;;  %v397_v46 = vld [vmem:[%s4217_s26 + $0xa50] sm:$0xff] }
  0x49   : > { %394 = vst [vmem:[%s4222_s27 + $0x510] sm:$0xff] %v393_v44  ;;  %396 = vst [vmem:[%s4222_s27 + $0x51c] sm:$0xff] %v395_v45  ;;  %v399_v47 = vld [vmem:[%s4217_s26 + $0xa68] sm:$0xff]  ;;  %v401_v48 = vld [vmem:[%s4217_s26 + $0xa80] sm:$0xff] }
  0x4a   : > { %398 = vst [vmem:[%s4222_s27 + $0x528] sm:$0xff] %v397_v46  ;;  %v403_v49 = vld [vmem:[%s4217_s26 + $0xa98] sm:$0xff]  ;;  %400 = vst [vmem:[%s4222_s27 + $0x534] sm:$0xff] %v399_v47  ;;  %v405_v50 = vld [vmem:[%s4217_s26 + $0xab0] sm:$0xff] }
  0x4b   : > { %402 = vst [vmem:[%s4222_s27 + $0x540] sm:$0xff] %v401_v48  ;;  %404 = vst [vmem:[%s4222_s27 + $0x54c] sm:$0xff] %v403_v49  ;;  %v407_v51 = vld [vmem:[%s4217_s26 + $0xac8] sm:$0xff]  ;;  %v409_v52 = vld [vmem:[%s4217_s26 + $0xae0] sm:$0xff] }
  0x4c   : > { %406 = vst [vmem:[%s4222_s27 + $0x558] sm:$0xff] %v405_v50  ;;  %408 = vst [vmem:[%s4222_s27 + $0x564] sm:$0xff] %v407_v51  ;;  %v411_v53 = vld [vmem:[%s4217_s26 + $0xaf8] sm:$0xff]  ;;  %v413_v54 = vld [vmem:[%s4217_s26 + $0xb10] sm:$0xff] }
  0x4d   : > { %410 = vst [vmem:[%s4222_s27 + $0x570] sm:$0xff] %v409_v52  ;;  %v415_v55 = vld [vmem:[%s4217_s26 + $0xb28] sm:$0xff]  ;;  %412 = vst [vmem:[%s4222_s27 + $0x57c] sm:$0xff] %v411_v53  ;;  %v417_v56 = vld [vmem:[%s4217_s26 + $0xb40] sm:$0xff] }
  0x4e   : > { %414 = vst [vmem:[%s4222_s27 + $0x588] sm:$0xff] %v413_v54  ;;  %416 = vst [vmem:[%s4222_s27 + $0x594] sm:$0xff] %v415_v55  ;;  %v419_v57 = vld [vmem:[%s4217_s26 + $0xb58] sm:$0xff]  ;;  %v421_v58 = vld [vmem:[%s4217_s26 + $0xb70] sm:$0xff] }
  0x4f   : > { %418 = vst [vmem:[%s4222_s27 + $0x5a0] sm:$0xff] %v417_v56  ;;  %420 = vst [vmem:[%s4222_s27 + $0x5ac] sm:$0xff] %v419_v57  ;;  %v423_v59 = vld [vmem:[%s4217_s26 + $0xb88] sm:$0xff]  ;;  %v425_v60 = vld [vmem:[%s4217_s26 + $0xba0] sm:$0xff] }
  0x50   : > { %422 = vst [vmem:[%s4222_s27 + $0x5b8] sm:$0xff] %v421_v58  ;;  %v427_v61 = vld [vmem:[%s4217_s26 + $0xbb8] sm:$0xff]  ;;  %424 = vst [vmem:[%s4222_s27 + $0x5c4] sm:$0xff] %v423_v59  ;;  %v429_v62 = vld [vmem:[%s4217_s26 + $0xbd0] sm:$0xff] }
  0x51   : > { %426 = vst [vmem:[%s4222_s27 + $0x5d0] sm:$0xff] %v425_v60  ;;  %428 = vst [vmem:[%s4222_s27 + $0x5dc] sm:$0xff] %v427_v61  ;;  %v431_v63 = vld [vmem:[%s4217_s26 + $0xbe8] sm:$0xff]  ;;  %v433_v0 = vld [vmem:[%s4217_s26 + $0xc00] sm:$0xff] }
  0x52   : > { %430 = vst [vmem:[%s4222_s27 + $0x5e8] sm:$0xff] %v429_v62  ;;  %432 = vst [vmem:[%s4222_s27 + $0x5f4] sm:$0xff] %v431_v63  ;;  %v435_v1 = vld [vmem:[%s4217_s26 + $0xc18] sm:$0xff]  ;;  %v437_v2 = vld [vmem:[%s4217_s26 + $0xc30] sm:$0xff] }
  0x53   : > { %434 = vst [vmem:[%s4222_s27 + $0x600] sm:$0xff] %v433_v0  ;;  %v439_v3 = vld [vmem:[%s4217_s26 + $0xc48] sm:$0xff]  ;;  %436 = vst [vmem:[%s4222_s27 + $0x60c] sm:$0xff] %v435_v1  ;;  %v441_v4 = vld [vmem:[%s4217_s26 + $0xc60] sm:$0xff] }
  0x54   : > { %438 = vst [vmem:[%s4222_s27 + $0x618] sm:$0xff] %v437_v2  ;;  %440 = vst [vmem:[%s4222_s27 + $0x624] sm:$0xff] %v439_v3  ;;  %v443_v5 = vld [vmem:[%s4217_s26 + $0xc78] sm:$0xff]  ;;  %v445_v6 = vld [vmem:[%s4217_s26 + $0xc90] sm:$0xff] }
  0x55   : > { %442 = vst [vmem:[%s4222_s27 + $0x630] sm:$0xff] %v441_v4  ;;  %444 = vst [vmem:[%s4222_s27 + $0x63c] sm:$0xff] %v443_v5  ;;  %v447_v7 = vld [vmem:[%s4217_s26 + $0xca8] sm:$0xff]  ;;  %v449_v8 = vld [vmem:[%s4217_s26 + $0xcc0] sm:$0xff] }
  0x56   : > { %446 = vst [vmem:[%s4222_s27 + $0x648] sm:$0xff] %v445_v6  ;;  %v451_v9 = vld [vmem:[%s4217_s26 + $0xcd8] sm:$0xff]  ;;  %448 = vst [vmem:[%s4222_s27 + $0x654] sm:$0xff] %v447_v7  ;;  %v453_v10 = vld [vmem:[%s4217_s26 + $0xcf0] sm:$0xff] }
  0x57   : > { %450 = vst [vmem:[%s4222_s27 + $0x660] sm:$0xff] %v449_v8  ;;  %452 = vst [vmem:[%s4222_s27 + $0x66c] sm:$0xff] %v451_v9  ;;  %v455_v11 = vld [vmem:[%s4217_s26 + $0xd08] sm:$0xff]  ;;  %v457_v12 = vld [vmem:[%s4217_s26 + $0xd20] sm:$0xff] }
  0x58   : > { %454 = vst [vmem:[%s4222_s27 + $0x678] sm:$0xff] %v453_v10  ;;  %456 = vst [vmem:[%s4222_s27 + $0x684] sm:$0xff] %v455_v11  ;;  %v459_v13 = vld [vmem:[%s4217_s26 + $0xd38] sm:$0xff]  ;;  %v461_v14 = vld [vmem:[%s4217_s26 + $0xd50] sm:$0xff] }
  0x59   : > { %458 = vst [vmem:[%s4222_s27 + $0x690] sm:$0xff] %v457_v12  ;;  %v463_v15 = vld [vmem:[%s4217_s26 + $0xd68] sm:$0xff]  ;;  %460 = vst [vmem:[%s4222_s27 + $0x69c] sm:$0xff] %v459_v13  ;;  %v465_v16 = vld [vmem:[%s4217_s26 + $0xd80] sm:$0xff] }
  0x5a   : > { %462 = vst [vmem:[%s4222_s27 + $0x6a8] sm:$0xff] %v461_v14  ;;  %464 = vst [vmem:[%s4222_s27 + $0x6b4] sm:$0xff] %v463_v15  ;;  %v467_v17 = vld [vmem:[%s4217_s26 + $0xd98] sm:$0xff]  ;;  %v469_v18 = vld [vmem:[%s4217_s26 + $0xdb0] sm:$0xff] }
  0x5b   : > { %466 = vst [vmem:[%s4222_s27 + $0x6c0] sm:$0xff] %v465_v16  ;;  %468 = vst [vmem:[%s4222_s27 + $0x6cc] sm:$0xff] %v467_v17  ;;  %v471_v19 = vld [vmem:[%s4217_s26 + $0xdc8] sm:$0xff]  ;;  %v473_v20 = vld [vmem:[%s4217_s26 + $0xde0] sm:$0xff] }
  0x5c   : > { %470 = vst [vmem:[%s4222_s27 + $0x6d8] sm:$0xff] %v469_v18  ;;  %v475_v21 = vld [vmem:[%s4217_s26 + $0xdf8] sm:$0xff]  ;;  %472 = vst [vmem:[%s4222_s27 + $0x6e4] sm:$0xff] %v471_v19  ;;  %v477_v22 = vld [vmem:[%s4217_s26 + $0xe10] sm:$0xff] }
  0x5d   : > { %474 = vst [vmem:[%s4222_s27 + $0x6f0] sm:$0xff] %v473_v20  ;;  %476 = vst [vmem:[%s4222_s27 + $0x6fc] sm:$0xff] %v475_v21  ;;  %v479_v23 = vld [vmem:[%s4217_s26 + $0xe28] sm:$0xff]  ;;  %v481_v24 = vld [vmem:[%s4217_s26 + $0xe40] sm:$0xff] }
  0x5e   : > { %478 = vst [vmem:[%s4222_s27 + $0x708] sm:$0xff] %v477_v22  ;;  %480 = vst [vmem:[%s4222_s27 + $0x714] sm:$0xff] %v479_v23  ;;  %v483_v25 = vld [vmem:[%s4217_s26 + $0xe58] sm:$0xff]  ;;  %v485_v26 = vld [vmem:[%s4217_s26 + $0xe70] sm:$0xff] }
  0x5f   : > { %482 = vst [vmem:[%s4222_s27 + $0x720] sm:$0xff] %v481_v24  ;;  %v487_v27 = vld [vmem:[%s4217_s26 + $0xe88] sm:$0xff]  ;;  %484 = vst [vmem:[%s4222_s27 + $0x72c] sm:$0xff] %v483_v25  ;;  %v3097_v29 = vld [vmem:[%s4217_s26 + $0x20] sm:$0xf] }
  0x60   : > { %486 = vst [vmem:[%s4222_s27 + $0x738] sm:$0xff] %v485_v26  ;;  %488 = vst [vmem:[%s4222_s27 + $0x744] sm:$0xff] %v487_v27  ;;  %v3095_v28 = vld [vmem:[%s4217_s26 + $0x8] sm:$0xf]  ;;  %v3099_v30 = vld [vmem:[%s4217_s26 + $0x38] sm:$0xf] }
  0x61   : > { %3096 = vst [vmem:[%s4222_s27 + $0x8] sm:$0xf] %v3095_v28  ;;  %3098 = vst [vmem:[%s4222_s27 + $0x14] sm:$0xf] %v3097_v29  ;;  %v3101_v31 = vld [vmem:[%s4217_s26 + $0x50] sm:$0xf] }
  0x62   : > { %3100 = vst [vmem:[%s4222_s27 + $0x20] sm:$0xf] %v3099_v30  ;;  %v3103_v32 = vld [vmem:[%s4217_s26 + $0x68] sm:$0xf]  ;;  %v3105_v33 = vld [vmem:[%s4217_s26 + $0x80] sm:$0xf] }
  0x63   : > { %3102 = vst [vmem:[%s4222_s27 + $0x2c] sm:$0xf] %v3101_v31  ;;  %3104 = vst [vmem:[%s4222_s27 + $0x38] sm:$0xf] %v3103_v32  ;;  %v3107_v34 = vld [vmem:[%s4217_s26 + $0x98] sm:$0xf] }
  0x64   : > { %3106 = vst [vmem:[%s4222_s27 + $0x44] sm:$0xf] %v3105_v33  ;;  %v3109_v35 = vld [vmem:[%s4217_s26 + $0xb0] sm:$0xf]  ;;  %v3111_v36 = vld [vmem:[%s4217_s26 + $0xc8] sm:$0xf] }
  0x65   : > { %3108 = vst [vmem:[%s4222_s27 + $0x50] sm:$0xf] %v3107_v34  ;;  %3110 = vst [vmem:[%s4222_s27 + $0x5c] sm:$0xf] %v3109_v35  ;;  %v3113_v37 = vld [vmem:[%s4217_s26 + $0xe0] sm:$0xf] }
  0x66   : > { %3112 = vst [vmem:[%s4222_s27 + $0x68] sm:$0xf] %v3111_v36  ;;  %v3115_v38 = vld [vmem:[%s4217_s26 + $0xf8] sm:$0xf]  ;;  %v3117_v39 = vld [vmem:[%s4217_s26 + $0x110] sm:$0xf] }
  0x67   : > { %3114 = vst [vmem:[%s4222_s27 + $0x74] sm:$0xf] %v3113_v37  ;;  %3116 = vst [vmem:[%s4222_s27 + $0x80] sm:$0xf] %v3115_v38  ;;  %v3119_v40 = vld [vmem:[%s4217_s26 + $0x128] sm:$0xf] }
  0x68   : > { %3118 = vst [vmem:[%s4222_s27 + $0x8c] sm:$0xf] %v3117_v39  ;;  %v3121_v41 = vld [vmem:[%s4217_s26 + $0x140] sm:$0xf]  ;;  %v3123_v42 = vld [vmem:[%s4217_s26 + $0x158] sm:$0xf] }
  0x69   : > { %3120 = vst [vmem:[%s4222_s27 + $0x98] sm:$0xf] %v3119_v40  ;;  %3122 = vst [vmem:[%s4222_s27 + $0xa4] sm:$0xf] %v3121_v41  ;;  %v3125_v43 = vld [vmem:[%s4217_s26 + $0x170] sm:$0xf] }
  0x6a   : > { %3124 = vst [vmem:[%s4222_s27 + $0xb0] sm:$0xf] %v3123_v42  ;;  %v3127_v44 = vld [vmem:[%s4217_s26 + $0x188] sm:$0xf]  ;;  %v3129_v45 = vld [vmem:[%s4217_s26 + $0x1a0] sm:$0xf] }
  0x6b   : > { %3126 = vst [vmem:[%s4222_s27 + $0xbc] sm:$0xf] %v3125_v43  ;;  %3128 = vst [vmem:[%s4222_s27 + $0xc8] sm:$0xf] %v3127_v44  ;;  %v3131_v46 = vld [vmem:[%s4217_s26 + $0x1b8] sm:$0xf] }
  0x6c   : > { %3130 = vst [vmem:[%s4222_s27 + $0xd4] sm:$0xf] %v3129_v45  ;;  %v3133_v47 = vld [vmem:[%s4217_s26 + $0x1d0] sm:$0xf]  ;;  %v3135_v48 = vld [vmem:[%s4217_s26 + $0x1e8] sm:$0xf] }
  0x6d   : > { %3132 = vst [vmem:[%s4222_s27 + $0xe0] sm:$0xf] %v3131_v46  ;;  %3134 = vst [vmem:[%s4222_s27 + $0xec] sm:$0xf] %v3133_v47  ;;  %v3137_v49 = vld [vmem:[%s4217_s26 + $0x200] sm:$0xf] }
  0x6e   : > { %3136 = vst [vmem:[%s4222_s27 + $0xf8] sm:$0xf] %v3135_v48  ;;  %v3139_v50 = vld [vmem:[%s4217_s26 + $0x218] sm:$0xf]  ;;  %v3141_v51 = vld [vmem:[%s4217_s26 + $0x230] sm:$0xf] }
  0x6f   : > { %3138 = vst [vmem:[%s4222_s27 + $0x104] sm:$0xf] %v3137_v49  ;;  %3140 = vst [vmem:[%s4222_s27 + $0x110] sm:$0xf] %v3139_v50  ;;  %v3143_v52 = vld [vmem:[%s4217_s26 + $0x248] sm:$0xf] }
  0x70   : > { %3142 = vst [vmem:[%s4222_s27 + $0x11c] sm:$0xf] %v3141_v51  ;;  %v3145_v53 = vld [vmem:[%s4217_s26 + $0x260] sm:$0xf]  ;;  %v3147_v54 = vld [vmem:[%s4217_s26 + $0x278] sm:$0xf] }
  0x71   : > { %3144 = vst [vmem:[%s4222_s27 + $0x128] sm:$0xf] %v3143_v52  ;;  %3146 = vst [vmem:[%s4222_s27 + $0x134] sm:$0xf] %v3145_v53  ;;  %v3149_v55 = vld [vmem:[%s4217_s26 + $0x290] sm:$0xf] }
  0x72   : > { %3148 = vst [vmem:[%s4222_s27 + $0x140] sm:$0xf] %v3147_v54  ;;  %v3151_v56 = vld [vmem:[%s4217_s26 + $0x2a8] sm:$0xf]  ;;  %v3153_v57 = vld [vmem:[%s4217_s26 + $0x2c0] sm:$0xf] }
  0x73   : > { %3150 = vst [vmem:[%s4222_s27 + $0x14c] sm:$0xf] %v3149_v55  ;;  %3152 = vst [vmem:[%s4222_s27 + $0x158] sm:$0xf] %v3151_v56  ;;  %v3155_v58 = vld [vmem:[%s4217_s26 + $0x2d8] sm:$0xf] }
  0x74   : > { %3154 = vst [vmem:[%s4222_s27 + $0x164] sm:$0xf] %v3153_v57  ;;  %v3157_v59 = vld [vmem:[%s4217_s26 + $0x2f0] sm:$0xf]  ;;  %v3159_v60 = vld [vmem:[%s4217_s26 + $0x308] sm:$0xf] }
  0x75   : > { %3156 = vst [vmem:[%s4222_s27 + $0x170] sm:$0xf] %v3155_v58  ;;  %3158 = vst [vmem:[%s4222_s27 + $0x17c] sm:$0xf] %v3157_v59  ;;  %v3161_v61 = vld [vmem:[%s4217_s26 + $0x320] sm:$0xf] }
  0x76   : > { %3160 = vst [vmem:[%s4222_s27 + $0x188] sm:$0xf] %v3159_v60  ;;  %v3163_v62 = vld [vmem:[%s4217_s26 + $0x338] sm:$0xf]  ;;  %v3165_v63 = vld [vmem:[%s4217_s26 + $0x350] sm:$0xf] }
  0x77   : > { %3162 = vst [vmem:[%s4222_s27 + $0x194] sm:$0xf] %v3161_v61  ;;  %3164 = vst [vmem:[%s4222_s27 + $0x1a0] sm:$0xf] %v3163_v62  ;;  %v3167_v0 = vld [vmem:[%s4217_s26 + $0x368] sm:$0xf] }
  0x78   : > { %3166 = vst [vmem:[%s4222_s27 + $0x1ac] sm:$0xf] %v3165_v63  ;;  %v3169_v1 = vld [vmem:[%s4217_s26 + $0x380] sm:$0xf]  ;;  %v3171_v2 = vld [vmem:[%s4217_s26 + $0x398] sm:$0xf] }
  0x79   : > { %3168 = vst [vmem:[%s4222_s27 + $0x1b8] sm:$0xf] %v3167_v0  ;;  %3170 = vst [vmem:[%s4222_s27 + $0x1c4] sm:$0xf] %v3169_v1  ;;  %v3173_v3 = vld [vmem:[%s4217_s26 + $0x3b0] sm:$0xf] }
  0x7a   : > { %3172 = vst [vmem:[%s4222_s27 + $0x1d0] sm:$0xf] %v3171_v2  ;;  %v3175_v4 = vld [vmem:[%s4217_s26 + $0x3c8] sm:$0xf]  ;;  %v3177_v5 = vld [vmem:[%s4217_s26 + $0x3e0] sm:$0xf] }
  0x7b   : > { %3174 = vst [vmem:[%s4222_s27 + $0x1dc] sm:$0xf] %v3173_v3  ;;  %3176 = vst [vmem:[%s4222_s27 + $0x1e8] sm:$0xf] %v3175_v4  ;;  %v3179_v6 = vld [vmem:[%s4217_s26 + $0x3f8] sm:$0xf] }
  0x7c   : > { %3178 = vst [vmem:[%s4222_s27 + $0x1f4] sm:$0xf] %v3177_v5  ;;  %v3181_v7 = vld [vmem:[%s4217_s26 + $0x410] sm:$0xf]  ;;  %v3183_v8 = vld [vmem:[%s4217_s26 + $0x428] sm:$0xf] }
  0x7d   : > { %3180 = vst [vmem:[%s4222_s27 + $0x200] sm:$0xf] %v3179_v6  ;;  %3182 = vst [vmem:[%s4222_s27 + $0x20c] sm:$0xf] %v3181_v7  ;;  %v3185_v9 = vld [vmem:[%s4217_s26 + $0x440] sm:$0xf] }
  0x7e   : > { %3184 = vst [vmem:[%s4222_s27 + $0x218] sm:$0xf] %v3183_v8  ;;  %v3187_v10 = vld [vmem:[%s4217_s26 + $0x458] sm:$0xf]  ;;  %v3189_v11 = vld [vmem:[%s4217_s26 + $0x470] sm:$0xf] }
  0x7f   : > { %3186 = vst [vmem:[%s4222_s27 + $0x224] sm:$0xf] %v3185_v9  ;;  %3188 = vst [vmem:[%s4222_s27 + $0x230] sm:$0xf] %v3187_v10  ;;  %v3191_v12 = vld [vmem:[%s4217_s26 + $0x488] sm:$0xf] }
  0x80   : > { %3190 = vst [vmem:[%s4222_s27 + $0x23c] sm:$0xf] %v3189_v11  ;;  %v3193_v13 = vld [vmem:[%s4217_s26 + $0x4a0] sm:$0xf]  ;;  %v3195_v14 = vld [vmem:[%s4217_s26 + $0x4b8] sm:$0xf] }
  0x81   : > { %3192 = vst [vmem:[%s4222_s27 + $0x248] sm:$0xf] %v3191_v12  ;;  %3194 = vst [vmem:[%s4222_s27 + $0x254] sm:$0xf] %v3193_v13  ;;  %v3197_v15 = vld [vmem:[%s4217_s26 + $0x4d0] sm:$0xf] }
  0x82   : > { %3196 = vst [vmem:[%s4222_s27 + $0x260] sm:$0xf] %v3195_v14  ;;  %v3199_v16 = vld [vmem:[%s4217_s26 + $0x4e8] sm:$0xf]  ;;  %v3201_v17 = vld [vmem:[%s4217_s26 + $0x500] sm:$0xf] }
  0x83   : > { %3198 = vst [vmem:[%s4222_s27 + $0x26c] sm:$0xf] %v3197_v15  ;;  %3200 = vst [vmem:[%s4222_s27 + $0x278] sm:$0xf] %v3199_v16  ;;  %v3203_v18 = vld [vmem:[%s4217_s26 + $0x518] sm:$0xf] }
  0x84   : > { %3202 = vst [vmem:[%s4222_s27 + $0x284] sm:$0xf] %v3201_v17  ;;  %v3205_v19 = vld [vmem:[%s4217_s26 + $0x530] sm:$0xf]  ;;  %v3207_v20 = vld [vmem:[%s4217_s26 + $0x548] sm:$0xf] }
  0x85   : > { %3204 = vst [vmem:[%s4222_s27 + $0x290] sm:$0xf] %v3203_v18  ;;  %3206 = vst [vmem:[%s4222_s27 + $0x29c] sm:$0xf] %v3205_v19  ;;  %v3209_v21 = vld [vmem:[%s4217_s26 + $0x560] sm:$0xf] }
  0x86   : > { %3208 = vst [vmem:[%s4222_s27 + $0x2a8] sm:$0xf] %v3207_v20  ;;  %v3211_v22 = vld [vmem:[%s4217_s26 + $0x578] sm:$0xf]  ;;  %v3213_v23 = vld [vmem:[%s4217_s26 + $0x590] sm:$0xf] }
  0x87   : > { %3210 = vst [vmem:[%s4222_s27 + $0x2b4] sm:$0xf] %v3209_v21  ;;  %3212 = vst [vmem:[%s4222_s27 + $0x2c0] sm:$0xf] %v3211_v22  ;;  %v3215_v24 = vld [vmem:[%s4217_s26 + $0x5a8] sm:$0xf] }
  0x88   : > { %3214 = vst [vmem:[%s4222_s27 + $0x2cc] sm:$0xf] %v3213_v23  ;;  %v3217_v25 = vld [vmem:[%s4217_s26 + $0x5c0] sm:$0xf]  ;;  %v3219_v26 = vld [vmem:[%s4217_s26 + $0x5d8] sm:$0xf] }
  0x89   : > { %3216 = vst [vmem:[%s4222_s27 + $0x2d8] sm:$0xf] %v3215_v24  ;;  %3218 = vst [vmem:[%s4222_s27 + $0x2e4] sm:$0xf] %v3217_v25  ;;  %v3221_v27 = vld [vmem:[%s4217_s26 + $0x5f0] sm:$0xf] }
  0x8a   : > { %3220 = vst [vmem:[%s4222_s27 + $0x2f0] sm:$0xf] %v3219_v26  ;;  %v3223_v28 = vld [vmem:[%s4217_s26 + $0x608] sm:$0xf]  ;;  %v3225_v29 = vld [vmem:[%s4217_s26 + $0x620] sm:$0xf] }
  0x8b   : > { %3222 = vst [vmem:[%s4222_s27 + $0x2fc] sm:$0xf] %v3221_v27  ;;  %3224 = vst [vmem:[%s4222_s27 + $0x308] sm:$0xf] %v3223_v28  ;;  %v3227_v30 = vld [vmem:[%s4217_s26 + $0x638] sm:$0xf] }
  0x8c   : > { %3226 = vst [vmem:[%s4222_s27 + $0x314] sm:$0xf] %v3225_v29  ;;  %v3229_v31 = vld [vmem:[%s4217_s26 + $0x650] sm:$0xf]  ;;  %v3231_v32 = vld [vmem:[%s4217_s26 + $0x668] sm:$0xf] }
  0x8d   : > { %3228 = vst [vmem:[%s4222_s27 + $0x320] sm:$0xf] %v3227_v30  ;;  %3230 = vst [vmem:[%s4222_s27 + $0x32c] sm:$0xf] %v3229_v31  ;;  %v3233_v33 = vld [vmem:[%s4217_s26 + $0x680] sm:$0xf] }
  0x8e   : > { %3232 = vst [vmem:[%s4222_s27 + $0x338] sm:$0xf] %v3231_v32  ;;  %v3235_v34 = vld [vmem:[%s4217_s26 + $0x698] sm:$0xf]  ;;  %v3237_v35 = vld [vmem:[%s4217_s26 + $0x6b0] sm:$0xf] }
  0x8f   : > { %3234 = vst [vmem:[%s4222_s27 + $0x344] sm:$0xf] %v3233_v33  ;;  %3236 = vst [vmem:[%s4222_s27 + $0x350] sm:$0xf] %v3235_v34  ;;  %v3239_v36 = vld [vmem:[%s4217_s26 + $0x6c8] sm:$0xf] }
  0x90   : > { %3238 = vst [vmem:[%s4222_s27 + $0x35c] sm:$0xf] %v3237_v35  ;;  %v3241_v37 = vld [vmem:[%s4217_s26 + $0x6e0] sm:$0xf]  ;;  %v3243_v38 = vld [vmem:[%s4217_s26 + $0x6f8] sm:$0xf] }
  0x91   : > { %3240 = vst [vmem:[%s4222_s27 + $0x368] sm:$0xf] %v3239_v36  ;;  %3242 = vst [vmem:[%s4222_s27 + $0x374] sm:$0xf] %v3241_v37  ;;  %v3245_v39 = vld [vmem:[%s4217_s26 + $0x710] sm:$0xf] }
  0x92   : > { %3244 = vst [vmem:[%s4222_s27 + $0x380] sm:$0xf] %v3243_v38  ;;  %v3247_v40 = vld [vmem:[%s4217_s26 + $0x728] sm:$0xf]  ;;  %v3249_v41 = vld [vmem:[%s4217_s26 + $0x740] sm:$0xf] }
  0x93   : > { %3246 = vst [vmem:[%s4222_s27 + $0x38c] sm:$0xf] %v3245_v39  ;;  %3248 = vst [vmem:[%s4222_s27 + $0x398] sm:$0xf] %v3247_v40  ;;  %v3251_v42 = vld [vmem:[%s4217_s26 + $0x758] sm:$0xf] }
  0x94   : > { %3250 = vst [vmem:[%s4222_s27 + $0x3a4] sm:$0xf] %v3249_v41  ;;  %v3253_v43 = vld [vmem:[%s4217_s26 + $0x770] sm:$0xf]  ;;  %v3255_v44 = vld [vmem:[%s4217_s26 + $0x788] sm:$0xf] }
  0x95   : > { %3252 = vst [vmem:[%s4222_s27 + $0x3b0] sm:$0xf] %v3251_v42  ;;  %3254 = vst [vmem:[%s4222_s27 + $0x3bc] sm:$0xf] %v3253_v43  ;;  %v3257_v45 = vld [vmem:[%s4217_s26 + $0x7a0] sm:$0xf] }
  0x96   : > { %3256 = vst [vmem:[%s4222_s27 + $0x3c8] sm:$0xf] %v3255_v44  ;;  %v3259_v46 = vld [vmem:[%s4217_s26 + $0x7b8] sm:$0xf]  ;;  %v3261_v47 = vld [vmem:[%s4217_s26 + $0x7d0] sm:$0xf] }
  0x97   : > { %3258 = vst [vmem:[%s4222_s27 + $0x3d4] sm:$0xf] %v3257_v45  ;;  %3260 = vst [vmem:[%s4222_s27 + $0x3e0] sm:$0xf] %v3259_v46  ;;  %v3263_v48 = vld [vmem:[%s4217_s26 + $0x7e8] sm:$0xf] }
  0x98   : > { %3262 = vst [vmem:[%s4222_s27 + $0x3ec] sm:$0xf] %v3261_v47  ;;  %v3265_v49 = vld [vmem:[%s4217_s26 + $0x800] sm:$0xf]  ;;  %v3267_v50 = vld [vmem:[%s4217_s26 + $0x818] sm:$0xf] }
  0x99   : > { %3264 = vst [vmem:[%s4222_s27 + $0x3f8] sm:$0xf] %v3263_v48  ;;  %3266 = vst [vmem:[%s4222_s27 + $0x404] sm:$0xf] %v3265_v49  ;;  %v3269_v51 = vld [vmem:[%s4217_s26 + $0x830] sm:$0xf] }
  0x9a   : > { %3268 = vst [vmem:[%s4222_s27 + $0x410] sm:$0xf] %v3267_v50  ;;  %v3271_v52 = vld [vmem:[%s4217_s26 + $0x848] sm:$0xf]  ;;  %v3273_v53 = vld [vmem:[%s4217_s26 + $0x860] sm:$0xf] }
  0x9b   : > { %3270 = vst [vmem:[%s4222_s27 + $0x41c] sm:$0xf] %v3269_v51  ;;  %3272 = vst [vmem:[%s4222_s27 + $0x428] sm:$0xf] %v3271_v52  ;;  %v3275_v54 = vld [vmem:[%s4217_s26 + $0x878] sm:$0xf] }
  0x9c   : > { %3274 = vst [vmem:[%s4222_s27 + $0x434] sm:$0xf] %v3273_v53  ;;  %v3277_v55 = vld [vmem:[%s4217_s26 + $0x890] sm:$0xf]  ;;  %v3279_v56 = vld [vmem:[%s4217_s26 + $0x8a8] sm:$0xf] }
  0x9d   : > { %3276 = vst [vmem:[%s4222_s27 + $0x440] sm:$0xf] %v3275_v54  ;;  %3278 = vst [vmem:[%s4222_s27 + $0x44c] sm:$0xf] %v3277_v55  ;;  %v3281_v57 = vld [vmem:[%s4217_s26 + $0x8c0] sm:$0xf] }
  0x9e   : > { %3280 = vst [vmem:[%s4222_s27 + $0x458] sm:$0xf] %v3279_v56  ;;  %v3283_v58 = vld [vmem:[%s4217_s26 + $0x8d8] sm:$0xf]  ;;  %v3285_v59 = vld [vmem:[%s4217_s26 + $0x8f0] sm:$0xf] }
  0x9f   : > { %3282 = vst [vmem:[%s4222_s27 + $0x464] sm:$0xf] %v3281_v57  ;;  %3284 = vst [vmem:[%s4222_s27 + $0x470] sm:$0xf] %v3283_v58  ;;  %v3287_v60 = vld [vmem:[%s4217_s26 + $0x908] sm:$0xf] }
  0xa0   : > { %3286 = vst [vmem:[%s4222_s27 + $0x47c] sm:$0xf] %v3285_v59  ;;  %v3289_v61 = vld [vmem:[%s4217_s26 + $0x920] sm:$0xf]  ;;  %v3291_v62 = vld [vmem:[%s4217_s26 + $0x938] sm:$0xf] }
  0xa1   : > { %3288 = vst [vmem:[%s4222_s27 + $0x488] sm:$0xf] %v3287_v60  ;;  %3290 = vst [vmem:[%s4222_s27 + $0x494] sm:$0xf] %v3289_v61  ;;  %v3293_v63 = vld [vmem:[%s4217_s26 + $0x950] sm:$0xf] }
  0xa2   : > { %3292 = vst [vmem:[%s4222_s27 + $0x4a0] sm:$0xf] %v3291_v62  ;;  %v3295_v0 = vld [vmem:[%s4217_s26 + $0x968] sm:$0xf]  ;;  %v3297_v1 = vld [vmem:[%s4217_s26 + $0x980] sm:$0xf] }
  0xa3   : > { %3294 = vst [vmem:[%s4222_s27 + $0x4ac] sm:$0xf] %v3293_v63  ;;  %3296 = vst [vmem:[%s4222_s27 + $0x4b8] sm:$0xf] %v3295_v0  ;;  %v3299_v2 = vld [vmem:[%s4217_s26 + $0x998] sm:$0xf] }
  0xa4   : > { %3298 = vst [vmem:[%s4222_s27 + $0x4c4] sm:$0xf] %v3297_v1  ;;  %v3301_v3 = vld [vmem:[%s4217_s26 + $0x9b0] sm:$0xf]  ;;  %v3303_v4 = vld [vmem:[%s4217_s26 + $0x9c8] sm:$0xf] }
  0xa5   : > { %3300 = vst [vmem:[%s4222_s27 + $0x4d0] sm:$0xf] %v3299_v2  ;;  %3302 = vst [vmem:[%s4222_s27 + $0x4dc] sm:$0xf] %v3301_v3  ;;  %v3305_v5 = vld [vmem:[%s4217_s26 + $0x9e0] sm:$0xf] }
  0xa6   : > { %3304 = vst [vmem:[%s4222_s27 + $0x4e8] sm:$0xf] %v3303_v4  ;;  %v3307_v6 = vld [vmem:[%s4217_s26 + $0x9f8] sm:$0xf]  ;;  %v3309_v7 = vld [vmem:[%s4217_s26 + $0xa10] sm:$0xf] }
  0xa7   : > { %3306 = vst [vmem:[%s4222_s27 + $0x4f4] sm:$0xf] %v3305_v5  ;;  %3308 = vst [vmem:[%s4222_s27 + $0x500] sm:$0xf] %v3307_v6  ;;  %v3311_v8 = vld [vmem:[%s4217_s26 + $0xa28] sm:$0xf] }
  0xa8   : > { %3310 = vst [vmem:[%s4222_s27 + $0x50c] sm:$0xf] %v3309_v7  ;;  %v3313_v9 = vld [vmem:[%s4217_s26 + $0xa40] sm:$0xf]  ;;  %v3315_v10 = vld [vmem:[%s4217_s26 + $0xa58] sm:$0xf] }
  0xa9   : > { %3312 = vst [vmem:[%s4222_s27 + $0x518] sm:$0xf] %v3311_v8  ;;  %3314 = vst [vmem:[%s4222_s27 + $0x524] sm:$0xf] %v3313_v9  ;;  %v3317_v11 = vld [vmem:[%s4217_s26 + $0xa70] sm:$0xf] }
  0xaa   : > { %3316 = vst [vmem:[%s4222_s27 + $0x530] sm:$0xf] %v3315_v10  ;;  %v3319_v12 = vld [vmem:[%s4217_s26 + $0xa88] sm:$0xf]  ;;  %v3321_v13 = vld [vmem:[%s4217_s26 + $0xaa0] sm:$0xf] }
  0xab   : > { %3318 = vst [vmem:[%s4222_s27 + $0x53c] sm:$0xf] %v3317_v11  ;;  %3320 = vst [vmem:[%s4222_s27 + $0x548] sm:$0xf] %v3319_v12  ;;  %v3323_v14 = vld [vmem:[%s4217_s26 + $0xab8] sm:$0xf] }
  0xac   : > { %3322 = vst [vmem:[%s4222_s27 + $0x554] sm:$0xf] %v3321_v13  ;;  %v3325_v15 = vld [vmem:[%s4217_s26 + $0xad0] sm:$0xf]  ;;  %v3327_v16 = vld [vmem:[%s4217_s26 + $0xae8] sm:$0xf] }
  0xad   : > { %3324 = vst [vmem:[%s4222_s27 + $0x560] sm:$0xf] %v3323_v14  ;;  %3326 = vst [vmem:[%s4222_s27 + $0x56c] sm:$0xf] %v3325_v15  ;;  %v3329_v17 = vld [vmem:[%s4217_s26 + $0xb00] sm:$0xf] }
  0xae   : > { %3328 = vst [vmem:[%s4222_s27 + $0x578] sm:$0xf] %v3327_v16  ;;  %v3331_v18 = vld [vmem:[%s4217_s26 + $0xb18] sm:$0xf]  ;;  %v3333_v19 = vld [vmem:[%s4217_s26 + $0xb30] sm:$0xf] }
  0xaf   : > { %3330 = vst [vmem:[%s4222_s27 + $0x584] sm:$0xf] %v3329_v17  ;;  %3332 = vst [vmem:[%s4222_s27 + $0x590] sm:$0xf] %v3331_v18  ;;  %v3335_v20 = vld [vmem:[%s4217_s26 + $0xb48] sm:$0xf] }
  0xb0   : > { %3334 = vst [vmem:[%s4222_s27 + $0x59c] sm:$0xf] %v3333_v19  ;;  %v3337_v21 = vld [vmem:[%s4217_s26 + $0xb60] sm:$0xf]  ;;  %v3339_v22 = vld [vmem:[%s4217_s26 + $0xb78] sm:$0xf] }
  0xb1   : > { %3336 = vst [vmem:[%s4222_s27 + $0x5a8] sm:$0xf] %v3335_v20  ;;  %3338 = vst [vmem:[%s4222_s27 + $0x5b4] sm:$0xf] %v3337_v21  ;;  %v3341_v23 = vld [vmem:[%s4217_s26 + $0xb90] sm:$0xf] }
  0xb2   : > { %3340 = vst [vmem:[%s4222_s27 + $0x5c0] sm:$0xf] %v3339_v22  ;;  %v3343_v24 = vld [vmem:[%s4217_s26 + $0xba8] sm:$0xf]  ;;  %v3345_v25 = vld [vmem:[%s4217_s26 + $0xbc0] sm:$0xf] }
  0xb3   : > { %3342 = vst [vmem:[%s4222_s27 + $0x5cc] sm:$0xf] %v3341_v23  ;;  %3344 = vst [vmem:[%s4222_s27 + $0x5d8] sm:$0xf] %v3343_v24  ;;  %v3347_v26 = vld [vmem:[%s4217_s26 + $0xbd8] sm:$0xf] }
  0xb4   : > { %3346 = vst [vmem:[%s4222_s27 + $0x5e4] sm:$0xf] %v3345_v25  ;;  %v3349_v27 = vld [vmem:[%s4217_s26 + $0xbf0] sm:$0xf]  ;;  %v3351_v28 = vld [vmem:[%s4217_s26 + $0xc08] sm:$0xf] }
  0xb5   : > { %3348 = vst [vmem:[%s4222_s27 + $0x5f0] sm:$0xf] %v3347_v26  ;;  %3350 = vst [vmem:[%s4222_s27 + $0x5fc] sm:$0xf] %v3349_v27  ;;  %v3353_v29 = vld [vmem:[%s4217_s26 + $0xc20] sm:$0xf] }
  0xb6   : > { %3352 = vst [vmem:[%s4222_s27 + $0x608] sm:$0xf] %v3351_v28  ;;  %v3355_v30 = vld [vmem:[%s4217_s26 + $0xc38] sm:$0xf]  ;;  %v3357_v31 = vld [vmem:[%s4217_s26 + $0xc50] sm:$0xf] }
  0xb7   : > { %3354 = vst [vmem:[%s4222_s27 + $0x614] sm:$0xf] %v3353_v29  ;;  %3356 = vst [vmem:[%s4222_s27 + $0x620] sm:$0xf] %v3355_v30  ;;  %v3359_v32 = vld [vmem:[%s4217_s26 + $0xc68] sm:$0xf] }
  0xb8   : > { %3358 = vst [vmem:[%s4222_s27 + $0x62c] sm:$0xf] %v3357_v31  ;;  %v3361_v33 = vld [vmem:[%s4217_s26 + $0xc80] sm:$0xf]  ;;  %v3363_v34 = vld [vmem:[%s4217_s26 + $0xc98] sm:$0xf] }
  0xb9   : > { %3360 = vst [vmem:[%s4222_s27 + $0x638] sm:$0xf] %v3359_v32  ;;  %3362 = vst [vmem:[%s4222_s27 + $0x644] sm:$0xf] %v3361_v33  ;;  %v3365_v35 = vld [vmem:[%s4217_s26 + $0xcb0] sm:$0xf] }
  0xba   : > { %3364 = vst [vmem:[%s4222_s27 + $0x650] sm:$0xf] %v3363_v34  ;;  %v3367_v36 = vld [vmem:[%s4217_s26 + $0xcc8] sm:$0xf]  ;;  %v3369_v37 = vld [vmem:[%s4217_s26 + $0xce0] sm:$0xf] }
  0xbb   : > { %3366 = vst [vmem:[%s4222_s27 + $0x65c] sm:$0xf] %v3365_v35  ;;  %3368 = vst [vmem:[%s4222_s27 + $0x668] sm:$0xf] %v3367_v36  ;;  %v3371_v38 = vld [vmem:[%s4217_s26 + $0xcf8] sm:$0xf] }
  0xbc   : > { %3370 = vst [vmem:[%s4222_s27 + $0x674] sm:$0xf] %v3369_v37  ;;  %v3373_v39 = vld [vmem:[%s4217_s26 + $0xd10] sm:$0xf]  ;;  %v3375_v40 = vld [vmem:[%s4217_s26 + $0xd28] sm:$0xf] }
  0xbd   : > { %3372 = vst [vmem:[%s4222_s27 + $0x680] sm:$0xf] %v3371_v38  ;;  %3374 = vst [vmem:[%s4222_s27 + $0x68c] sm:$0xf] %v3373_v39  ;;  %v3377_v41 = vld [vmem:[%s4217_s26 + $0xd40] sm:$0xf] }
  0xbe   : > { %3376 = vst [vmem:[%s4222_s27 + $0x698] sm:$0xf] %v3375_v40  ;;  %v3379_v42 = vld [vmem:[%s4217_s26 + $0xd58] sm:$0xf]  ;;  %v3381_v43 = vld [vmem:[%s4217_s26 + $0xd70] sm:$0xf] }
  0xbf   : > { %3378 = vst [vmem:[%s4222_s27 + $0x6a4] sm:$0xf] %v3377_v41  ;;  %3380 = vst [vmem:[%s4222_s27 + $0x6b0] sm:$0xf] %v3379_v42  ;;  %v3383_v44 = vld [vmem:[%s4217_s26 + $0xd88] sm:$0xf] }
  0xc0   : > { %3382 = vst [vmem:[%s4222_s27 + $0x6bc] sm:$0xf] %v3381_v43  ;;  %v3385_v45 = vld [vmem:[%s4217_s26 + $0xda0] sm:$0xf]  ;;  %v3387_v46 = vld [vmem:[%s4217_s26 + $0xdb8] sm:$0xf] }
  0xc1   : > { %3384 = vst [vmem:[%s4222_s27 + $0x6c8] sm:$0xf] %v3383_v44  ;;  %3386 = vst [vmem:[%s4222_s27 + $0x6d4] sm:$0xf] %v3385_v45  ;;  %v3389_v47 = vld [vmem:[%s4217_s26 + $0xdd0] sm:$0xf] }
  0xc2   : > { %3388 = vst [vmem:[%s4222_s27 + $0x6e0] sm:$0xf] %v3387_v46  ;;  %v3391_v48 = vld [vmem:[%s4217_s26 + $0xde8] sm:$0xf]  ;;  %v3393_v49 = vld [vmem:[%s4217_s26 + $0xe00] sm:$0xf] }
  0xc3   : > { %3390 = vst [vmem:[%s4222_s27 + $0x6ec] sm:$0xf] %v3389_v47  ;;  %3392 = vst [vmem:[%s4222_s27 + $0x6f8] sm:$0xf] %v3391_v48  ;;  %v3395_v50 = vld [vmem:[%s4217_s26 + $0xe18] sm:$0xf] }
  0xc4   : > { %3394 = vst [vmem:[%s4222_s27 + $0x704] sm:$0xf] %v3393_v49  ;;  %v3397_v51 = vld [vmem:[%s4217_s26 + $0xe30] sm:$0xf]  ;;  %v3399_v52 = vld [vmem:[%s4217_s26 + $0xe48] sm:$0xf] }
  0xc5   : > { %3396 = vst [vmem:[%s4222_s27 + $0x710] sm:$0xf] %v3395_v50  ;;  %3398 = vst [vmem:[%s4222_s27 + $0x71c] sm:$0xf] %v3397_v51  ;;  %v3401_v53 = vld [vmem:[%s4217_s26 + $0xe60] sm:$0xf] }
  0xc6   : > { %3400 = vst [vmem:[%s4222_s27 + $0x728] sm:$0xf] %v3399_v52  ;;  %v3403_v54 = vld [vmem:[%s4217_s26 + $0xe78] sm:$0xf]  ;;  %v3405_v55 = vld [vmem:[%s4217_s26 + $0xe90] sm:$0xf] }
  0xc7   : > { %3402 = vst [vmem:[%s4222_s27 + $0x734] sm:$0xf] %v3401_v53  ;;  %3404 = vst [vmem:[%s4222_s27 + $0x740] sm:$0xf] %v3403_v54 }
  0xc8   : > { %3406 = vst [vmem:[%s4222_s27 + $0x74c] sm:$0xf] %v3405_v55 }
  0xc9 PF: > { %p3407_p6 = scmp.ge.s32.totalorder %s4149_s16, 1  ;;  %p820_p7 = scmp.lt.s32.totalorder %s4149_s16, 3 }
  0xcb   : > { %p821_p8 = pnand %p3407_p6, %p820_p7 }
  0xcc   : > { %s827_s28 = sand.u32 (!%p821_p8), 1, %s4133_s12   ;;  %v1199_v56 = vlaneseq (!%p821_p8)  ;;  %v4151_v57 = vmov (!%p821_p8), 1966171168   ;;  %v4853_v60 = vld [vmem:[%s5203_s0] sm:$0xff] (!%p821_p8)  ;;  %vm2544_vm0 = vcmask (!%p821_p8), 785408   ;;  %s867_s8 = smul.u32 (!%p821_p8), 3, %s4141_s14 }
  0xcd   : > { %824 = sbr.rel (%p821_p8) target bundleno = 681 (0x2a9), region = 54  ;;  %v1218_v58 = vunpack.c.l.s4 (!%p821_p8), %v4151_v57 }
  0xce   : > { %s3754_s29 = smul.u32 (!%p821_p8), 1872, %s827_s28  ;;  %v4848_v59 = vshrl.u32 (!%p821_p8), %v1199_v56, 7  ;;  %p868_p9 = scmp.lt.s32.totalorder (!%p821_p8), %s867_s8, 5 }
  0xcf   : > { %v1219_v61 = vunpack.c.0.s8 (!%p821_p8), %v1218_v58 }
  0xd0   : > { %s4855_s5 = scalar_lea.vmem (!%p821_p8), [#allocation2], %s3754_s29 }
  0xd1   : > { %v3798_v62 = vld [vmem:[%s4855_s5 + $0x4] ss:$12 sps:$4 sm:$0xff] (!%p821_p8)   ;;  %v4860_v0 = vsub.s32 (!%p821_p8), %v1219_v61, %v4848_v59  ;;  %v3802_v1 = vld [vmem:[%s4855_s5] ss:$12 sps:$4 sm:$0xff] (!%p821_p8)   ;;  %v3804_v3 = vld [vmem:[%s4855_s5 + $0x1c] ss:$12 sps:$4 sm:$0xff] (!%p821_p8)  }
  0xd2   : > { %v3800_v63 = vld [vmem:[%s4855_s5 + $0x184] ss:$12 sps:$4 sm:$0xff] (!%p821_p8)   ;;  %2548 = vmatprep.subr.bf16.mxu1 (!%p821_p8), %v3798_v62  ;;  %v3803_v2 = vld [vmem:[%s4855_s5 + $0x180] ss:$12 sps:$4 sm:$0xff] (!%p821_p8)   ;;  %v3806_v5 = vld [vmem:[%s4855_s5 + $0x19c] ss:$12 sps:$4 sm:$0xff] (!%p821_p8)  }
  0xd3   : > { %2589 = vmatprep.subr.bf16.mxu0 (!%p821_p8), %v3800_v63  ;;  %v4867_v4 = vrot.slane (!%p821_p8), %v4853_v60, %v4860_v0  ;;  %2549 = vmatpush1.bf16.msra.mxu1 (!%p821_p8), %v3802_v1  ;;  %v3808_v6 = vld [vmem:[%s4855_s5 + $0x18] ss:$12 sps:$4 sm:$0xff] (!%p821_p8)   ;;  %v3810_v9 = vld [vmem:[%s4855_s5 + $0x34] ss:$12 sps:$4 sm:$0xff] (!%p821_p8)   ;;  %v3814_v11 = vld [vmem:[%s4855_s5 + $0x30] ss:$12 sps:$4 sm:$0xff] (!%p821_p8)   ;;  %v1216_v1 = vcombine.high (!%p821_p8), %v4853_v60, %v4853_v60 }
  0xd4   : > { %2590 = vmatpush1.bf16.msra.mxu0 %v3803_v2  ;;  %2550 = vmatprep.subr.bf16.mxu1 %v3804_v3  ;;  %v3809_v7 = vld [vmem:[%s4855_s5 + $0x198] ss:$12 sps:$4 sm:$0xff]   ;;  %v3812_v10 = vld [vmem:[%s4855_s5 + $0x1b4] ss:$12 sps:$4 sm:$0xff]   ;;  %v3815_v12 = vld [vmem:[%s4855_s5 + $0x1b0] ss:$12 sps:$4 sm:$0xff]  }
  0xd5   : > { %v1231_v8 = vcombine.high %v4867_v4, %v4867_v4  ;;  %2591 = vmatprep.subr.bf16.mxu0 %v3806_v5  ;;  %v3816_v14 = vld [vmem:[%s4855_s5 + $0x4c] ss:$12 sps:$4 sm:$0xff]   ;;  %v3820_v17 = vld [vmem:[%s4855_s5 + $0x48] ss:$12 sps:$4 sm:$0xff]   ;;  %v3822_v19 = vld [vmem:[%s4855_s5 + $0x64] ss:$12 sps:$4 sm:$0xff]  }
  0xd6   : > { %v3818_v15 = vld [vmem:[%s4855_s5 + $0x1cc] ss:$12 sps:$4 sm:$0xff]   ;;  %v3821_v18 = vld [vmem:[%s4855_s5 + $0x1c8] ss:$12 sps:$4 sm:$0xff]   ;;  %v3824_v20 = vld [vmem:[%s4855_s5 + $0x1e4] ss:$12 sps:$4 sm:$0xff]  }
  0xd7   : > { %v4879_v13 = vrot.slane %v1231_v8, %v4860_v0  ;;  %2551 = vmatpush1.bf16.msra.mxu1 %v3808_v6  ;;  %v3826_v21 = vld [vmem:[%s4855_s5 + $0x60] ss:$12 sps:$4 sm:$0xff]   ;;  %v3828_v23 = vld [vmem:[%s4855_s5 + $0x7c] ss:$12 sps:$4 sm:$0xff]   ;;  %v3832_v25 = vld [vmem:[%s4855_s5 + $0x78] ss:$12 sps:$4 sm:$0xff]   ;;  %v4940_v6 = vrot.slane %v1216_v1, %v4860_v0  ;;  %v4945_v8 = vrot.slane %v4867_v4, %v4860_v0 }
  0xd8   : > { %2592 = vmatpush1.bf16.msra.mxu0 %v3809_v7  ;;  %2552 = vmatprep.subr.bf16.mxu1 %v3810_v9  ;;  %v3827_v22 = vld [vmem:[%s4855_s5 + $0x1e0] ss:$12 sps:$4 sm:$0xff]   ;;  %v3830_v24 = vld [vmem:[%s4855_s5 + $0x1fc] ss:$12 sps:$4 sm:$0xff]   ;;  %v3833_v26 = vld [vmem:[%s4855_s5 + $0x1f8] ss:$12 sps:$4 sm:$0xff]  }
  0xd9   : > { %2593 = vmatprep.subr.bf16.mxu0 %v3812_v10  ;;  %v4885_v16 = vcombine.high %v4879_v13, %v4879_v13  ;;  %2580 = vmatprep.mubr.bf16.mxu1 %v4879_v13  ;;  %v3834_v27 = vld [vmem:[%s4855_s5 + $0x94] ss:$12 sps:$4 sm:$0xff]   ;;  %v3838_v29 = vld [vmem:[%s4855_s5 + $0x90] ss:$12 sps:$4 sm:$0xff]   ;;  %v3840_v31 = vld [vmem:[%s4855_s5 + $0xac] ss:$12 sps:$4 sm:$0xff]  }
  0xda   : > { %v3836_v28 = vld [vmem:[%s4855_s5 + $0x214] ss:$12 sps:$4 sm:$0xff]   ;;  %v3839_v30 = vld [vmem:[%s4855_s5 + $0x210] ss:$12 sps:$4 sm:$0xff]   ;;  %v3842_v32 = vld [vmem:[%s4855_s5 + $0x22c] ss:$12 sps:$4 sm:$0xff]  }
  0xdb   : > { %2621 = vmatprep.mubr.bf16.mxu0 %v4885_v16  ;;  %2553 = vmatpush1.bf16.msra.mxu1 %v3814_v11  ;;  %v3844_v33 = vld [vmem:[%s4855_s5 + $0xa8] ss:$12 sps:$4 sm:$0xff]   ;;  %v3846_v35 = vld [vmem:[%s4855_s5 + $0xc4] ss:$12 sps:$4 sm:$0xff]   ;;  %v3850_v37 = vld [vmem:[%s4855_s5 + $0xc0] ss:$12 sps:$4 sm:$0xff]   ;;  %v1232_v11 = vcombine.high %v4940_v6, %v4940_v6 }
  0xdc   : > { %2594 = vmatpush1.bf16.msra.mxu0 %v3815_v12  ;;  %2554 = vmatprep.subr.bf16.mxu1 %v3816_v14  ;;  %v3845_v34 = vld [vmem:[%s4855_s5 + $0x228] ss:$12 sps:$4 sm:$0xff]   ;;  %v3848_v36 = vld [vmem:[%s4855_s5 + $0x244] ss:$12 sps:$4 sm:$0xff]   ;;  %v3851_v38 = vld [vmem:[%s4855_s5 + $0x240] ss:$12 sps:$4 sm:$0xff]   ;;  %v4955_v14 = vcombine.high %v4945_v8, %v4945_v8 }
  0xdd   : > { %2595 = vmatprep.subr.bf16.mxu0 %v3818_v15  ;;  %v3852_v39 = vld [vmem:[%s4855_s5 + $0xdc] ss:$12 sps:$4 sm:$0xff]   ;;  %v3856_v41 = vld [vmem:[%s4855_s5 + $0xd8] ss:$12 sps:$4 sm:$0xff]   ;;  %v3858_v43 = vld [vmem:[%s4855_s5 + $0xf4] ss:$12 sps:$4 sm:$0xff]  }
  0xde   : > { %v3854_v40 = vld [vmem:[%s4855_s5 + $0x25c] ss:$12 sps:$4 sm:$0xff]   ;;  %v3857_v42 = vld [vmem:[%s4855_s5 + $0x258] ss:$12 sps:$4 sm:$0xff]   ;;  %v3860_v44 = vld [vmem:[%s4855_s5 + $0x274] ss:$12 sps:$4 sm:$0xff]  }
  0xdf   : > { %2555 = vmatpush1.bf16.msra.mxu1 %v3820_v17  ;;  %v3862_v45 = vld [vmem:[%s4855_s5 + $0xf0] ss:$12 sps:$4 sm:$0xff]   ;;  %v3864_v47 = vld [vmem:[%s4855_s5 + $0x10c] ss:$12 sps:$4 sm:$0xff]   ;;  %v3868_v49 = vld [vmem:[%s4855_s5 + $0x108] ss:$12 sps:$4 sm:$0xff]  }
  0xe0   : > { %2596 = vmatpush1.bf16.msra.mxu0 %v3821_v18  ;;  %2556 = vmatprep.subr.bf16.mxu1 %v3822_v19  ;;  %v3863_v46 = vld [vmem:[%s4855_s5 + $0x270] ss:$12 sps:$4 sm:$0xff]   ;;  %v3866_v48 = vld [vmem:[%s4855_s5 + $0x28c] ss:$12 sps:$4 sm:$0xff]   ;;  %v3869_v50 = vld [vmem:[%s4855_s5 + $0x288] ss:$12 sps:$4 sm:$0xff]   ;;  %v4962_v19 = vrot.slane %v1232_v11, %v4860_v0 }
  0xe1   : > { %2597 = vmatprep.subr.bf16.mxu0 %v3824_v20  ;;  %v3870_v51 = vld [vmem:[%s4855_s5 + $0x124] ss:$12 sps:$4 sm:$0xff]   ;;  %v3874_v53 = vld [vmem:[%s4855_s5 + $0x120] ss:$12 sps:$4 sm:$0xff]   ;;  %v3876_v55 = vld [vmem:[%s4855_s5 + $0x13c] ss:$12 sps:$4 sm:$0xff]  }
  0xe2   : > { %v3872_v52 = vld [vmem:[%s4855_s5 + $0x2a4] ss:$12 sps:$4 sm:$0xff]   ;;  %v3875_v54 = vld [vmem:[%s4855_s5 + $0x2a0] ss:$12 sps:$4 sm:$0xff]   ;;  %v3878_v56 = vld [vmem:[%s4855_s5 + $0x2bc] ss:$12 sps:$4 sm:$0xff]  }
  0xe3   : > { %2557 = vmatpush1.bf16.msra.mxu1 %v3826_v21  ;;  %v3880_v57 = vld [vmem:[%s4855_s5 + $0x138] ss:$12 sps:$4 sm:$0xff]   ;;  %v3882_v61 = vld [vmem:[%s4855_s5 + $0x154] ss:$12 sps:$4 sm:$0xff]   ;;  %v3886_v63 = vld [vmem:[%s4855_s5 + $0x150] ss:$12 sps:$4 sm:$0xff]  }
  0xe4   : > { %2598 = vmatpush1.bf16.msra.mxu0 %v3827_v22  ;;  %2558 = vmatprep.subr.bf16.mxu1 %v3828_v23  ;;  %v3881_v58 = vld [vmem:[%s4855_s5 + $0x2b8] ss:$12 sps:$4 sm:$0xff]   ;;  %v3884_v62 = vld [vmem:[%s4855_s5 + $0x2d4] ss:$12 sps:$4 sm:$0xff]   ;;  %v3887_v2 = vld [vmem:[%s4855_s5 + $0x2d0] ss:$12 sps:$4 sm:$0xff]  }
  0xe5   : > { %2599 = vmatprep.subr.bf16.mxu0 %v3830_v24  ;;  %v3888_v3 = vld [vmem:[%s4855_s5 + $0x16c] ss:$12 sps:$4 sm:$0xff]   ;;  %v3892_v7 = vld [vmem:[%s4855_s5 + $0x168] ss:$12 sps:$4 sm:$0xff]   ;;  %v3896_v9 = vld [vmem:[%s4855_s5 + $0x304] ss:$12 sps:$4 sm:$0xff]  }
  0xe6   : > { %v3890_v5 = vld [vmem:[%s4855_s5 + $0x2ec] ss:$12 sps:$4 sm:$0xff]   ;;  %v3893_v60 = vld [vmem:[%s4855_s5 + $0x2e8] ss:$12 sps:$4 sm:$0xff]   ;;  %v3904_v23 = vld [vmem:[%s4855_s5 + $0x330] ss:$12 sps:$4 sm:$0xff]  }
  0xe7   : > { %2559 = vmatpush1.bf16.msra.mxu1 %v3832_v25  ;;  %v3897_v10 = vld [vmem:[%s4855_s5 + $0xc8] ss:$12 sps:$4 sm:$0xff]   ;;  %v3894_v12 = vld [vmem:[%s4855_s5 + $0x300] ss:$12 sps:$4 sm:$0xff]   ;;  %v3899_v18 = vld [vmem:[%s4855_s5 + $0x318] ss:$12 sps:$4 sm:$0xff]  }
  0xe8   : > { %2600 = vmatpush1.bf16.msra.mxu0 %v3833_v26  ;;  %2560 = vmatprep.subr.bf16.mxu1 %v3834_v27  ;;  %v3898_v4 = vld [vmem:[%s4855_s5 + $0x8] ss:$12 sps:$4 sm:$0xff]   ;;  %v3902_v17 = vld [vmem:[%s4855_s5 + $0xe0] ss:$12 sps:$4 sm:$0xff]   ;;  %v3907_v22 = vld [vmem:[%s4855_s5 + $0xf8] ss:$12 sps:$4 sm:$0xff]  }
  0xe9   : > { %2601 = vmatprep.subr.bf16.mxu0 %v3836_v28  ;;  %v3901_v15 = vld [vmem:[%s4855_s5 + $0x31c] ss:$12 sps:$4 sm:$0xff]   ;;  %v3903_v20 = vld [vmem:[%s4855_s5 + $0x20] ss:$12 sps:$4 sm:$0xff]   ;;  %v3908_v24 = vld [vmem:[%s4855_s5 + $0x38] ss:$12 sps:$4 sm:$0xff]  }
  0xea   : > { %v3906_v21 = vld [vmem:[%s4855_s5 + $0x334] ss:$12 sps:$4 sm:$0xff]   ;;  %v3911_v25 = vld [vmem:[%s4855_s5 + $0x34c] ss:$12 sps:$4 sm:$0xff]   ;;  %v3912_v26 = vld [vmem:[%s4855_s5 + $0x110] ss:$12 sps:$4 sm:$0xff]  }
  0xeb   : > { %2561 = vmatpush1.bf16.msra.mxu1 %v3838_v29  ;;  %v3909_v27 = vld [vmem:[%s4855_s5 + $0x348] ss:$12 sps:$4 sm:$0xff]   ;;  %v3913_v28 = vld [vmem:[%s4855_s5 + $0x50] ss:$12 sps:$4 sm:$0xff]   ;;  %v3971_v11 = vld [vmem:[%s4855_s5 + $0x46c] ss:$12 sps:$4 sm:$0xff]  }
  0xec   : > { %2602 = vmatpush1.bf16.msra.mxu0 %v3839_v30  ;;  %2562 = vmatprep.subr.bf16.mxu1 %v3840_v31  ;;  %v3917_v29 = vld [vmem:[%s4855_s5 + $0x128] ss:$12 sps:$4 sm:$0xff]   ;;  %v3914_v30 = vld [vmem:[%s4855_s5 + $0x360] ss:$12 sps:$4 sm:$0xff]   ;;  %s5214_s8 = smov (!%p868_p9, %s867_s8), 5 }
  0xed   : > { %2603 = vmatprep.subr.bf16.mxu0 %v3842_v32  ;;  %v3918_v31 = vld [vmem:[%s4855_s5 + $0x68] ss:$12 sps:$4 sm:$0xff]   ;;  %s870_s11 = scalar_lea.vmem %s5205_s2, %s5214_s8  ;;  %s3408_s12 = sshll.u32 %s5214_s8, 1 }
  0xee   : > { %v3921_v32 = vld [vmem:[%s4855_s5 + $0x37c] ss:$12 sps:$4 sm:$0xff]   ;;  %s880_s19 = scalar_lea.vmem %s5206_s3, %s3408_s12 }
  0xef   : > { %2563 = vmatpush1.bf16.msra.mxu1 %v3844_v33  ;;  %v3922_v33 = vld [vmem:[%s4855_s5 + $0x140] ss:$12 sps:$4 sm:$0xff]   ;;  %v3958_v1 = vld [vmem:[%s4855_s5 + $0x1e8] ss:$12 sps:$4 sm:$0xff]  }
  0xf0   : > { %2604 = vmatpush1.bf16.msra.mxu0 %v3845_v34  ;;  %2564 = vmatprep.subr.bf16.mxu1 %v3846_v35  ;;  %v3919_v34 = vld [vmem:[%s4855_s5 + $0x378] ss:$12 sps:$4 sm:$0xff]   ;;  %v3923_v35 = vld [vmem:[%s4855_s5 + $0x80] ss:$12 sps:$4 sm:$0xff]  }
  0xf1   : > { %2605 = vmatprep.subr.bf16.mxu0 %v3848_v36  ;;  %v3926_v36 = vld [vmem:[%s4855_s5 + $0x394] ss:$12 sps:$4 sm:$0xff]  }
  0xf3   : > { %2565 = vmatpush1.bf16.msra.mxu1 %v3850_v37  ;;  %v3927_v37 = vld [vmem:[%s4855_s5 + $0x158] ss:$12 sps:$4 sm:$0xff]  }
  0xf4   : > { %2606 = vmatpush1.bf16.msra.mxu0 %v3851_v38  ;;  %2566 = vmatprep.subr.bf16.mxu1 %v3852_v39  ;;  %v3924_v38 = vld [vmem:[%s4855_s5 + $0x390] ss:$12 sps:$4 sm:$0xff]   ;;  %v3928_v39 = vld [vmem:[%s4855_s5 + $0x98] ss:$12 sps:$4 sm:$0xff]  }
  0xf5   : > { %2607 = vmatprep.subr.bf16.mxu0 %v3854_v40  ;;  %v3931_v40 = vld [vmem:[%s4855_s5 + $0x3ac] ss:$12 sps:$4 sm:$0xff]  }
  0xf7   : > { %2567 = vmatpush1.bf16.msra.mxu1 %v3856_v41  ;;  %v3932_v41 = vld [vmem:[%s4855_s5 + $0x170] ss:$12 sps:$4 sm:$0xff]  }
  0xf8   : > { %2608 = vmatpush1.bf16.msra.mxu0 %v3857_v42  ;;  %2568 = vmatprep.subr.bf16.mxu1 %v3858_v43  ;;  %v3929_v42 = vld [vmem:[%s4855_s5 + $0x3a8] ss:$12 sps:$4 sm:$0xff]   ;;  %v3933_v43 = vld [vmem:[%s4855_s5 + $0xb0] ss:$12 sps:$4 sm:$0xff]  }
  0xf9   : > { %2609 = vmatprep.subr.bf16.mxu0 %v3860_v44  ;;  %v3936_v44 = vld [vmem:[%s4855_s5 + $0x3c4] ss:$12 sps:$4 sm:$0xff]  }
  0xfb   : > { %2569 = vmatpush1.bf16.msra.mxu1 %v3862_v45  ;;  %v3937_v45 = vld [vmem:[%s4855_s5 + $0x248] ss:$12 sps:$4 sm:$0xff]  }
  0xfc   : > { %2610 = vmatpush1.bf16.msra.mxu0 %v3863_v46  ;;  %2570 = vmatprep.subr.bf16.mxu1 %v3864_v47  ;;  %v3934_v46 = vld [vmem:[%s4855_s5 + $0x3c0] ss:$12 sps:$4 sm:$0xff]   ;;  %v3938_v47 = vld [vmem:[%s4855_s5 + $0x188] ss:$12 sps:$4 sm:$0xff]  }
  0xfd   : > { %2611 = vmatprep.subr.bf16.mxu0 %v3866_v48  ;;  %v3941_v48 = vld [vmem:[%s4855_s5 + $0x3dc] ss:$12 sps:$4 sm:$0xff]  }
  0xff   : > { %2571 = vmatpush1.bf16.msra.mxu1 %v3868_v49  ;;  %v3942_v49 = vld [vmem:[%s4855_s5 + $0x260] ss:$12 sps:$4 sm:$0xff]  }
 0x100   : > { %2612 = vmatpush1.bf16.msra.mxu0 %v3869_v50  ;;  %2572 = vmatprep.subr.bf16.mxu1 %v3870_v51  ;;  %v3939_v50 = vld [vmem:[%s4855_s5 + $0x3d8] ss:$12 sps:$4 sm:$0xff]   ;;  %v3943_v51 = vld [vmem:[%s4855_s5 + $0x1a0] ss:$12 sps:$4 sm:$0xff]  }
 0x101   : > { %2613 = vmatprep.subr.bf16.mxu0 %v3872_v52  ;;  %v3946_v52 = vld [vmem:[%s4855_s5 + $0x3f4] ss:$12 sps:$4 sm:$0xff]  }
 0x103   : > { %2573 = vmatpush1.bf16.msra.mxu1 %v3874_v53  ;;  %v3947_v53 = vld [vmem:[%s4855_s5 + $0x278] ss:$12 sps:$4 sm:$0xff]  }
 0x104   : > { %2614 = vmatpush1.bf16.msra.mxu0 %v3875_v54  ;;  %2574 = vmatprep.subr.bf16.mxu1 %v3876_v55  ;;  %v3944_v54 = vld [vmem:[%s4855_s5 + $0x3f0] ss:$12 sps:$4 sm:$0xff]   ;;  %v3948_v55 = vld [vmem:[%s4855_s5 + $0x1b8] ss:$12 sps:$4 sm:$0xff]  }
 0x105   : > { %2615 = vmatprep.subr.bf16.mxu0 %v3878_v56  ;;  %v3951_v56 = vld [vmem:[%s4855_s5 + $0x40c] ss:$12 sps:$4 sm:$0xff]  }
 0x107   : > { %2575 = vmatpush1.bf16.msra.mxu1 %v3880_v57  ;;  %v3952_v57 = vld [vmem:[%s4855_s5 + $0x290] ss:$12 sps:$4 sm:$0xff]  }
 0x108   : > { %2616 = vmatpush1.bf16.msra.mxu0 %v3881_v58  ;;  %2576 = vmatprep.subr.bf16.mxu1 %v3882_v61  ;;  %v3949_v58 = vld [vmem:[%s4855_s5 + $0x408] ss:$12 sps:$4 sm:$0xff]   ;;  %v3953_v61 = vld [vmem:[%s4855_s5 + $0x1d0] ss:$12 sps:$4 sm:$0xff]  }
 0x109   : > { %2617 = vmatprep.subr.bf16.mxu0 %v3884_v62  ;;  %v3957_v62 = vld [vmem:[%s4855_s5 + $0x2a8] ss:$12 sps:$4 sm:$0xff]  }
 0x10b   : > { %2577 = vmatpush1.bf16.msra.mxu1 %v3886_v63  ;;  %v3954_v63 = vld [vmem:[%s4855_s5 + $0x420] ss:$12 sps:$4 sm:$0xff]  }
 0x10c   : > { %2618 = vmatpush1.bf16.msra.mxu0 %v3887_v2  ;;  %2578 = vmatprep.subr.bf16.mxu1 %v3888_v3  ;;  %v3961_v2 = vld [vmem:[%s4855_s5 + $0x43c] ss:$12 sps:$4 sm:$0xff]   ;;  %v3962_v3 = vld [vmem:[%s4855_s5 + $0x2c0] ss:$12 sps:$4 sm:$0xff]  }
 0x10d   : > { %2619 = vmatprep.subr.bf16.mxu0 %v3890_v5  ;;  %v3959_v5 = vld [vmem:[%s4855_s5 + $0x438] ss:$12 sps:$4 sm:$0xff]  }
 0x10f   : > { %2579 = vmatpush1.bf16.msra.mxu1 %v3892_v7  ;;  %v3963_v7 = vld [vmem:[%s4855_s5 + $0x200] ss:$12 sps:$4 sm:$0xff]  }
 0x110   : > { %2620 = vmatpush1.bf16.msra.mxu0 %v3893_v60  ;;  %3649 = vmatprep.subr.bf16.mxu1 %v3897_v10  ;;  %v3967_v60 = vld [vmem:[%s4855_s5 + $0x2d8] ss:$12 sps:$4 sm:$0xff]  }
 0x111   : > { %2630 = vmatprep.subr.bf16.mxu0 %v3896_v9  ;;  %v3964_v9 = vld [vmem:[%s4855_s5 + $0x450] ss:$12 sps:$4 sm:$0xff]   ;;  %v3968_v10 = vld [vmem:[%s4855_s5 + $0x218] ss:$12 sps:$4 sm:$0xff]  }
 0x112   : > { %2581 = vmatmul.mubr.bf16.vlgmr.msra.gmra.mrb[0].mxu1 %v4945_v8 }
 0x113   : > { %2622 = vmatmul.mubr.bf16.vlgmr.msra.gmra.mrb[0].mxu0 %v4955_v14  ;;  %3650 = vmatpush3.bf16.msra.mxu1 %v3898_v4  ;;  %v3969_v4 = vld [vmem:[%s4855_s5 + $0x468] ss:$12 sps:$4 sm:$0xff]  }
 0x114   : > { %2631 = vmatpush1.bf16.msra.mxu0 %v3894_v12  ;;  %3651 = vmatprep.subr.bf16.mxu1 %v3902_v17  ;;  %v3972_v12 = vld [vmem:[%s4855_s5 + $0x2f0] ss:$12 sps:$4 sm:$0xff]  }
 0x115   : > { %2632 = vmatprep.subr.bf16.mxu0 %v3901_v15  ;;  %2785 = vmatprep.mubr.bf16.mxu1 %v4879_v13  ;;  %v3916_v13 = vld [vmem:[%s4855_s5 + $0x364] ss:$12 sps:$4 sm:$0xff]  }
 0x116   : > { %2662 = vmatprep.mubr.bf16.mxu0 %v4962_v19  ;;  %v3973_v15 = vld [vmem:[%s4855_s5 + $0x230] ss:$12 sps:$4 sm:$0xff]  }
 0x117   : > { %3652 = vmatpush3.bf16.msra.mxu1 %v3903_v20  ;;  %v3977_v17 = vld [vmem:[%s4855_s5 + $0x484] ss:$12 sps:$4 sm:$0xff]   ;;  %v3975_v20 = vld [vmem:[%s4855_s5 + $0x480] ss:$12 sps:$4 sm:$0xff]  }
 0x118   : > { %2633 = vmatpush1.bf16.msra.mxu0 %v3899_v18  ;;  %3653 = vmatprep.subr.bf16.mxu1 %v3907_v22  ;;  %v3978_v18 = vld [vmem:[%s4855_s5 + $0x3c8] ss:$12 sps:$4 sm:$0xff]  }
 0x119   : > { %2634 = vmatprep.subr.bf16.mxu0 %v3906_v21  ;;  %v5032_v21 = vrot.slane %v4940_v6, %v4860_v0  ;;  %v3979_v22 = vld [vmem:[%s4855_s5 + $0x308] ss:$12 sps:$4 sm:$0xff]   ;;  %v3980_v6 = vld [vmem:[%s4855_s5 + $0x498] ss:$12 sps:$4 sm:$0xff]  }
 0x11b   : > { %3654 = vmatpush3.bf16.msra.mxu1 %v3908_v24  ;;  %v3983_v24 = vld [vmem:[%s4855_s5 + $0x3e0] ss:$12 sps:$4 sm:$0xff]  }
 0x11c   : > { %2635 = vmatpush1.bf16.msra.mxu0 %v3904_v23  ;;  %3655 = vmatprep.subr.bf16.mxu1 %v3912_v26  ;;  %v3982_v23 = vld [vmem:[%s4855_s5 + $0x49c] ss:$12 sps:$4 sm:$0xff]   ;;  %v3984_v26 = vld [vmem:[%s4855_s5 + $0x320] ss:$12 sps:$4 sm:$0xff]  }
 0x11d   : > { %2636 = vmatprep.subr.bf16.mxu0 %v3911_v25  ;;  %v5039_v25 = vcombine.high %v4962_v19, %v4962_v19 }
 0x11f   : > { %3656 = vmatpush3.bf16.msra.mxu1 %v3913_v28  ;;  %v3988_v28 = vld [vmem:[%s4855_s5 + $0x3f8] ss:$12 sps:$4 sm:$0xff]  }
 0x120   : > { %2637 = vmatpush1.bf16.msra.mxu0 %v3909_v27  ;;  %3657 = vmatprep.subr.bf16.mxu1 %v3917_v29  ;;  %v3987_v27 = vld [vmem:[%s4855_s5 + $0x4b4] ss:$12 sps:$4 sm:$0xff]   ;;  %v3992_v29 = vld [vmem:[%s4855_s5 + $0x4cc] ss:$12 sps:$4 sm:$0xff]  }
 0x121   : > { %2638 = vmatprep.subr.bf16.mxu0 %v3916_v13  ;;  %v3985_v13 = vld [vmem:[%s4855_s5 + $0x4b0] ss:$12 sps:$4 sm:$0xff]  }
 0x123   : > { %3658 = vmatpush3.bf16.msra.mxu1 %v3918_v31  ;;  %v3990_v31 = vld [vmem:[%s4855_s5 + $0x4c8] ss:$12 sps:$4 sm:$0xff]  }
 0x124   : > { %2639 = vmatpush1.bf16.msra.mxu0 %v3914_v30  ;;  %3659 = vmatprep.subr.bf16.mxu1 %v3922_v33  ;;  %v3993_v30 = vld [vmem:[%s4855_s5 + $0x410] ss:$12 sps:$4 sm:$0xff]   ;;  %v3998_v33 = vld [vmem:[%s4855_s5 + $0x428] ss:$12 sps:$4 sm:$0xff]  }
 0x125   : > { %2640 = vmatprep.subr.bf16.mxu0 %v3921_v32  ;;  %v3997_v32 = vld [vmem:[%s4855_s5 + $0x4e4] ss:$12 sps:$4 sm:$0xff]  }
 0x127   : > { %3660 = vmatpush3.bf16.msra.mxu1 %v3923_v35  ;;  %v3999_v35 = vld [vmem:[%s4855_s5 + $0x368] ss:$12 sps:$4 sm:$0xff]  }
 0x128   : > { %2641 = vmatpush1.bf16.msra.mxu0 %v3919_v34  ;;  %3661 = vmatprep.subr.bf16.mxu1 %v3927_v37  ;;  %v3995_v34 = vld [vmem:[%s4855_s5 + $0x4e0] ss:$12 sps:$4 sm:$0xff]  }
 0x129   : > { %2642 = vmatprep.subr.bf16.mxu0 %v3926_v36  ;;  %v4002_v36 = vld [vmem:[%s4855_s5 + $0x4fc] ss:$12 sps:$4 sm:$0xff]   ;;  %v4003_v37 = vld [vmem:[%s4855_s5 + $0x440] ss:$12 sps:$4 sm:$0xff]  }
 0x12b   : > { %3662 = vmatpush3.bf16.msra.mxu1 %v3928_v39  ;;  %v4004_v39 = vld [vmem:[%s4855_s5 + $0x380] ss:$12 sps:$4 sm:$0xff]  }
 0x12c   : > { %2643 = vmatpush1.bf16.msra.mxu0 %v3924_v38  ;;  %3663 = vmatprep.subr.bf16.mxu1 %v3932_v41  ;;  %v4000_v38 = vld [vmem:[%s4855_s5 + $0x4f8] ss:$12 sps:$4 sm:$0xff]  }
 0x12d   : > { %2644 = vmatprep.subr.bf16.mxu0 %v3931_v40  ;;  %v4007_v40 = vld [vmem:[%s4855_s5 + $0x514] ss:$12 sps:$4 sm:$0xff]   ;;  %v4008_v41 = vld [vmem:[%s4855_s5 + $0x458] ss:$12 sps:$4 sm:$0xff]  }
 0x12f   : > { %3664 = vmatpush3.bf16.msra.mxu1 %v3933_v43  ;;  %v4009_v43 = vld [vmem:[%s4855_s5 + $0x398] ss:$12 sps:$4 sm:$0xff]  }
 0x130   : > { %2645 = vmatpush1.bf16.msra.mxu0 %v3929_v42  ;;  %3671 = vmatprep.subr.bf16.mxu1 %v3937_v45  ;;  %v4005_v42 = vld [vmem:[%s4855_s5 + $0x510] ss:$12 sps:$4 sm:$0xff]  }
 0x131   : > { %2646 = vmatprep.subr.bf16.mxu0 %v3936_v44  ;;  %v4012_v44 = vld [vmem:[%s4855_s5 + $0x52c] ss:$12 sps:$4 sm:$0xff]   ;;  %v4013_v45 = vld [vmem:[%s4855_s5 + $0x470] ss:$12 sps:$4 sm:$0xff]  }
 0x132   : > { %2786 = vmatmul.mubr.bf16.vlgmr.msra.gmra.mrb[4].mxu1 %v4945_v8  ;;  %v3966_v8 = vld [vmem:[%s4855_s5 + $0x454] ss:$12 sps:$4 sm:$0xff]  }
 0x133   : > { %3672 = vmatpush3.bf16.msra.mxu1 %v3938_v47  ;;  %2825 = vmatprep.mubr.bf16.mxu1 %v4885_v16  ;;  %v3956_v16 = vld [vmem:[%s4855_s5 + $0x424] ss:$12 sps:$4 sm:$0xff]  }
 0x134   : > { %2647 = vmatpush1.bf16.msra.mxu0 %v3934_v46  ;;  %3673 = vmatprep.subr.bf16.mxu1 %v3942_v49  ;;  %v4010_v46 = vld [vmem:[%s4855_s5 + $0x528] ss:$12 sps:$4 sm:$0xff]   ;;  %v4014_v47 = vld [vmem:[%s4855_s5 + $0x3b0] ss:$12 sps:$4 sm:$0xff]  }
 0x135   : > { %2648 = vmatprep.subr.bf16.mxu0 %v3941_v48  ;;  %v4017_v48 = vld [vmem:[%s4855_s5 + $0x544] ss:$12 sps:$4 sm:$0xff]   ;;  %v4018_v49 = vld [vmem:[%s4855_s5 + $0x548] ss:$12 sps:$4 sm:$0xff]  }
 0x137   : > { %3674 = vmatpush3.bf16.msra.mxu1 %v3943_v51  ;;  %v4019_v51 = vld [vmem:[%s4855_s5 + $0x488] ss:$12 sps:$4 sm:$0xff]  }
 0x138   : > { %2649 = vmatpush1.bf16.msra.mxu0 %v3939_v50  ;;  %3675 = vmatprep.subr.bf16.mxu1 %v3947_v53  ;;  %v4015_v50 = vld [vmem:[%s4855_s5 + $0x540] ss:$12 sps:$4 sm:$0xff]  }
 0x139   : > { %2650 = vmatprep.subr.bf16.mxu0 %v3946_v52  ;;  %v4022_v52 = vld [vmem:[%s4855_s5 + $0x55c] ss:$12 sps:$4 sm:$0xff]   ;;  %v4023_v53 = vld [vmem:[%s4855_s5 + $0x560] ss:$12 sps:$4 sm:$0xff]  }
 0x13b   : > { %3676 = vmatpush3.bf16.msra.mxu1 %v3948_v55  ;;  %v4024_v55 = vld [vmem:[%s4855_s5 + $0x4a0] ss:$12 sps:$4 sm:$0xff]  }
 0x13c   : > { %2651 = vmatpush1.bf16.msra.mxu0 %v3944_v54  ;;  %3677 = vmatprep.subr.bf16.mxu1 %v3952_v57  ;;  %v4020_v54 = vld [vmem:[%s4855_s5 + $0x558] ss:$12 sps:$4 sm:$0xff]  }
 0x13d   : > { %2652 = vmatprep.subr.bf16.mxu0 %v3951_v56  ;;  %v4027_v56 = vld [vmem:[%s4855_s5 + $0x574] ss:$12 sps:$4 sm:$0xff]   ;;  %v4028_v57 = vld [vmem:[%s4855_s5 + $0x578] ss:$12 sps:$4 sm:$0xff]  }
 0x13f   : > { %3678 = vmatpush3.bf16.msra.mxu1 %v3953_v61  ;;  %v4029_v61 = vld [vmem:[%s4855_s5 + $0x4b8] ss:$12 sps:$4 sm:$0xff]  }
 0x140   : > { %2653 = vmatpush1.bf16.msra.mxu0 %v3949_v58  ;;  %3679 = vmatprep.subr.bf16.mxu1 %v3957_v62  ;;  %v4025_v58 = vld [vmem:[%s4855_s5 + $0x570] ss:$12 sps:$4 sm:$0xff]  }
 0x141   : > { %2654 = vmatprep.subr.bf16.mxu0 %v3956_v16  ;;  %v4032_v16 = vld [vmem:[%s4855_s5 + $0x58c] ss:$12 sps:$4 sm:$0xff]   ;;  %v4033_v62 = vld [vmem:[%s4855_s5 + $0x590] ss:$12 sps:$4 sm:$0xff]  }
 0x143   : > { %3680 = vmatpush3.bf16.msra.mxu1 %v3958_v1  ;;  %v4034_v1 = vld [vmem:[%s4855_s5 + $0x4d0] ss:$12 sps:$4 sm:$0xff]  }
 0x144   : > { %2655 = vmatpush1.bf16.msra.mxu0 %v3954_v63  ;;  %3681 = vmatprep.subr.bf16.mxu1 %v3962_v3  ;;  %v4030_v63 = vld [vmem:[%s4855_s5 + $0x588] ss:$12 sps:$4 sm:$0xff]  }
 0x145   : > { %2656 = vmatprep.subr.bf16.mxu0 %v3961_v2  ;;  %v4037_v2 = vld [vmem:[%s4855_s5 + $0x5a4] ss:$12 sps:$4 sm:$0xff]   ;;  %v4038_v3 = vld [vmem:[%s4855_s5 + $0x5a8] ss:$12 sps:$4 sm:$0xff]  }
 0x147   : > { %3682 = vmatpush3.bf16.msra.mxu1 %v3963_v7  ;;  %v4039_v7 = vld [vmem:[%s4855_s5 + $0x4e8] ss:$12 sps:$4 sm:$0xff]  }
 0x148   : > { %2657 = vmatpush1.bf16.msra.mxu0 %v3959_v5  ;;  %3683 = vmatprep.subr.bf16.mxu1 %v3967_v60  ;;  %v4035_v5 = vld [vmem:[%s4855_s5 + $0x5a0] ss:$12 sps:$4 sm:$0xff]  }
 0x149   : > { %2658 = vmatprep.subr.bf16.mxu0 %v3966_v8  ;;  %v4042_v8 = vld [vmem:[%s4855_s5 + $0x5bc] ss:$12 sps:$4 sm:$0xff]   ;;  %v4043_v60 = vld [vmem:[%s4855_s5 + $0x5c0] ss:$12 sps:$4 sm:$0xff]  }
 0x14b   : > { %3684 = vmatpush3.bf16.msra.mxu1 %v3968_v10  ;;  %v4044_v10 = vld [vmem:[%s4855_s5 + $0x500] ss:$12 sps:$4 sm:$0xff]  }
 0x14c   : > { %2659 = vmatpush1.bf16.msra.mxu0 %v3964_v9  ;;  %3685 = vmatprep.subr.bf16.mxu1 %v3972_v12  ;;  %v4040_v9 = vld [vmem:[%s4855_s5 + $0x5b8] ss:$12 sps:$4 sm:$0xff]  }
 0x14d   : > { %2660 = vmatprep.subr.bf16.mxu0 %v3971_v11  ;;  %v4047_v11 = vld [vmem:[%s4855_s5 + $0x5d4] ss:$12 sps:$4 sm:$0xff]   ;;  %v4048_v12 = vld [vmem:[%s4855_s5 + $0x5d8] ss:$12 sps:$4 sm:$0xff]  }
 0x14f   : > { %3686 = vmatpush3.bf16.msra.mxu1 %v3973_v15  ;;  %v4049_v15 = vld [vmem:[%s4855_s5 + $0x518] ss:$12 sps:$4 sm:$0xff]  }
 0x150   : > { %2661 = vmatpush1.bf16.msra.mxu0 %v3969_v4  ;;  %3693 = vmatprep.subr.bf16.mxu1 %v3978_v18  ;;  %v4045_v4 = vld [vmem:[%s4855_s5 + $0x5d0] ss:$12 sps:$4 sm:$0xff]  }
 0x151   : > { %2671 = vmatprep.subr.bf16.mxu0 %v3977_v17  ;;  %v4052_v17 = vld [vmem:[%s4855_s5 + $0x5ec] ss:$12 sps:$4 sm:$0xff]   ;;  %v4053_v18 = vld [vmem:[%s4855_s5 + $0x5f0] ss:$12 sps:$4 sm:$0xff]  }
 0x152   : > { %2826 = vmatmul.mubr.bf16.vlgmr.msra.gmra.mrb[8].mxu1 %v4955_v14  ;;  %v3989_v14 = vld [vmem:[%s4855_s5 + $0x338] ss:$12 sps:$4 sm:$0xff]  }
 0x153   : > { %2663 = vmatmul.mubr.bf16.vlgmr.msra.gmra.mrb[0].mxu0 %v5032_v21  ;;  %3694 = vmatpush3.bf16.msra.mxu1 %v3979_v22  ;;  %v4050_v22 = vld [vmem:[%s4855_s5 + $0x5e8] ss:$12 sps:$4 sm:$0xff]  }
 0x154   : > { %2672 = vmatpush1.bf16.msra.mxu0 %v3975_v20  ;;  %3695 = vmatprep.subr.bf16.mxu1 %v3983_v24  ;;  %v5106_v20 = vld.sshfl [vmem:[%s5203_s0 + $0x8] sm:$0x11 pattern:$0x75316420]  ;;  %v4057_v24 = vld [vmem:[%s4855_s5 + $0x604] ss:$12 sps:$4 sm:$0xff]  }
 0x155   : > { %2673 = vmatprep.subr.bf16.mxu0 %v3982_v23  ;;  %2865 = vmatprep.mubr.bf16.mxu1 %v4962_v19  ;;  %v3994_v19 = vld [vmem:[%s4855_s5 + $0x350] ss:$12 sps:$4 sm:$0xff]  }
 0x156   : > { %2703 = vmatprep.mubr.bf16.mxu0 %v5039_v25  ;;  %v4054_v23 = vld [vmem:[%s4855_s5 + $0x530] ss:$12 sps:$4 sm:$0xff]  }
 0x157   : > { %3696 = vmatpush3.bf16.msra.mxu1 %v3984_v26  ;;  %v4055_v26 = vld [vmem:[%s4855_s5 + $0x600] ss:$12 sps:$4 sm:$0xff]  }
 0x158   : > { %2674 = vmatpush1.bf16.msra.mxu0 %v3980_v6  ;;  %3697 = vmatprep.subr.bf16.mxu1 %v3988_v28  ;;  %v1262_v6 = vcombine.high %v5032_v21, %v5032_v21  ;;  %v4152_v28 = vmov 0  }
 0x159   : > { %2675 = vmatprep.subr.bf16.mxu0 %v3987_v27  ;;  %v4058_v27 = vld [vmem:[%s4855_s5 + $0x608] ss:$12 sps:$4 sm:$0xff]  }
 0x15b   : > { %3698 = vmatpush3.bf16.msra.mxu1 %v3989_v14 }
 0x15c   : > { %2676 = vmatpush1.bf16.msra.mxu0 %v3985_v13  ;;  %3699 = vmatprep.subr.bf16.mxu1 %v3993_v30  ;;  %v4061_v13 = vld [vmem:[%s4855_s5 + $0x61c] ss:$12 sps:$4 sm:$0xff]   ;;  %v4065_v30 = vld [vmem:[%s4855_s5 + $0x634] ss:$12 sps:$4 sm:$0xff]  }
 0x15d   : > { %2677 = vmatprep.subr.bf16.mxu0 %v3992_v29  ;;  %v4062_v29 = vld [vmem:[%s4855_s5 + $0x620] ss:$12 sps:$4 sm:$0xff]  }
 0x15f   : > { %3700 = vmatpush3.bf16.msra.mxu1 %v3994_v19  ;;  %v4066_v19 = vld [vmem:[%s4855_s5 + $0x638] ss:$12 sps:$4 sm:$0xff]  }
 0x160   : > { %2678 = vmatpush1.bf16.msra.mxu0 %v3990_v31  ;;  %3701 = vmatprep.subr.bf16.mxu1 %v3998_v33  ;;  %v4063_v31 = vld [vmem:[%s4855_s5 + $0x630] ss:$12 sps:$4 sm:$0xff]   ;;  %v4067_v33 = vld [vmem:[%s4855_s5 + $0x648] ss:$12 sps:$4 sm:$0xff]  }
 0x161   : > { %2679 = vmatprep.subr.bf16.mxu0 %v3997_v32  ;;  %v4069_v32 = vld [vmem:[%s4855_s5 + $0x64c] ss:$12 sps:$4 sm:$0xff]  }
 0x163   : > { %3702 = vmatpush3.bf16.msra.mxu1 %v3999_v35  ;;  %v4073_v35 = vld [vmem:[%s4855_s5 + $0x664] ss:$12 sps:$4 sm:$0xff]  }
 0x164   : > { %2680 = vmatpush1.bf16.msra.mxu0 %v3995_v34  ;;  %3703 = vmatprep.subr.bf16.mxu1 %v4003_v37  ;;  %v4070_v34 = vld [vmem:[%s4855_s5 + $0x650] ss:$12 sps:$4 sm:$0xff]   ;;  %v4074_v37 = vld [vmem:[%s4855_s5 + $0x668] ss:$12 sps:$4 sm:$0xff]  }
 0x165   : > { %2681 = vmatprep.subr.bf16.mxu0 %v4002_v36  ;;  %v4071_v36 = vld [vmem:[%s4855_s5 + $0x660] ss:$12 sps:$4 sm:$0xff]  }
 0x167   : > { %3704 = vmatpush3.bf16.msra.mxu1 %v4004_v39  ;;  %v4075_v39 = vld [vmem:[%s4855_s5 + $0x678] ss:$12 sps:$4 sm:$0xff]  }
 0x168   : > { %2682 = vmatpush1.bf16.msra.mxu0 %v4000_v38  ;;  %3705 = vmatprep.subr.bf16.mxu1 %v4008_v41  ;;  %v4077_v38 = vld [vmem:[%s4855_s5 + $0x67c] ss:$12 sps:$4 sm:$0xff]   ;;  %v4081_v41 = vld [vmem:[%s4855_s5 + $0x694] ss:$12 sps:$4 sm:$0xff]  }
 0x169   : > { %2683 = vmatprep.subr.bf16.mxu0 %v4007_v40  ;;  %v4078_v40 = vld [vmem:[%s4855_s5 + $0x680] ss:$12 sps:$4 sm:$0xff]  }
 0x16b   : > { %3706 = vmatpush3.bf16.msra.mxu1 %v4009_v43  ;;  %v4082_v43 = vld [vmem:[%s4855_s5 + $0x698] ss:$12 sps:$4 sm:$0xff]  }
 0x16c   : > { %2684 = vmatpush1.bf16.msra.mxu0 %v4005_v42  ;;  %3707 = vmatprep.subr.bf16.mxu1 %v4013_v45  ;;  %v4079_v42 = vld [vmem:[%s4855_s5 + $0x690] ss:$12 sps:$4 sm:$0xff]   ;;  %v4083_v45 = vld [vmem:[%s4855_s5 + $0x6a8] ss:$12 sps:$4 sm:$0xff]  }
 0x16d   : > { %2685 = vmatprep.subr.bf16.mxu0 %v4012_v44  ;;  %v4085_v44 = vld [vmem:[%s4855_s5 + $0x6ac] ss:$12 sps:$4 sm:$0xff]  }
 0x16f   : > { %3708 = vmatpush3.bf16.msra.mxu1 %v4014_v47  ;;  %v4089_v47 = vld [vmem:[%s4855_s5 + $0x6c4] ss:$12 sps:$4 sm:$0xff]  }
 0x170   : > { %2686 = vmatpush1.bf16.msra.mxu0 %v4010_v46  ;;  %3715 = vmatprep.subr.bf16.mxu1 %v4018_v49  ;;  %v4086_v46 = vld [vmem:[%s4855_s5 + $0x6b0] ss:$12 sps:$4 sm:$0xff]   ;;  %v4090_v49 = vld [vmem:[%s4855_s5 + $0x6c8] ss:$12 sps:$4 sm:$0xff]  }
 0x171   : > { %2687 = vmatprep.subr.bf16.mxu0 %v4017_v48  ;;  %v4087_v48 = vld [vmem:[%s4855_s5 + $0x6c0] ss:$12 sps:$4 sm:$0xff]  }
 0x172   : > { %2866 = vmatmul.mubr.bf16.vlgmr.msra.gmra.mrb[12].mxu1 %v5032_v21  ;;  %v4059_v21 = vld [vmem:[%s4855_s5 + $0x618] ss:$12 sps:$4 sm:$0xff]  }
 0x173   : > { %3716 = vmatpush3.bf16.msra.mxu1 %v4019_v51  ;;  %2905 = vmatprep.mubr.bf16.mxu1 %v5039_v25  ;;  %v1272_v25 = vcombine.high %v5106_v20, %v5106_v20  ;;  %v4091_v51 = vld [vmem:[%s4855_s5 + $0x6d8] ss:$12 sps:$4 sm:$0xff]  }
 0x174   : > { %2688 = vmatpush1.bf16.msra.mxu0 %v4015_v50  ;;  %3717 = vmatprep.subr.bf16.mxu1 %v4023_v53  ;;  %v4093_v50 = vld [vmem:[%s4855_s5 + $0x6dc] ss:$12 sps:$4 sm:$0xff]   ;;  %v4097_v53 = vld [vmem:[%s4855_s5 + $0x6f4] ss:$12 sps:$4 sm:$0xff]  }
 0x175   : > { %2689 = vmatprep.subr.bf16.mxu0 %v4022_v52  ;;  %v1286_v14 = vrot.slane %v1272_v25, %v4860_v0  ;;  %v4094_v52 = vld [vmem:[%s4855_s5 + $0x6e0] ss:$12 sps:$4 sm:$0xff]  }
 0x177   : > { %3718 = vmatpush3.bf16.msra.mxu1 %v4024_v55  ;;  %v4098_v55 = vld [vmem:[%s4855_s5 + $0x6f8] ss:$12 sps:$4 sm:$0xff]  }
 0x178   : > { %2690 = vmatpush1.bf16.msra.mxu0 %v4020_v54  ;;  %3719 = vmatprep.subr.bf16.mxu1 %v4028_v57  ;;  %v4095_v54 = vld [vmem:[%s4855_s5 + $0x6f0] ss:$12 sps:$4 sm:$0xff]   ;;  %v4099_v57 = vld [vmem:[%s4855_s5 + $0x708] ss:$12 sps:$4 sm:$0xff]  }
 0x179   : > { %2691 = vmatprep.subr.bf16.mxu0 %v4027_v56  ;;  %v4101_v56 = vld [vmem:[%s4855_s5 + $0x70c] ss:$12 sps:$4 sm:$0xff]  }
 0x17b   : > { %3720 = vmatpush3.bf16.msra.mxu1 %v4029_v61  ;;  %v4105_v61 = vld [vmem:[%s4855_s5 + $0x724] ss:$12 sps:$4 sm:$0xff]  }
 0x17c   : > { %2692 = vmatpush1.bf16.msra.mxu0 %v4025_v58  ;;  %3721 = vmatprep.subr.bf16.mxu1 %v4033_v62  ;;  %v4102_v58 = vld [vmem:[%s4855_s5 + $0x710] ss:$12 sps:$4 sm:$0xff]   ;;  %v4106_v62 = vld [vmem:[%s4855_s5 + $0x728] ss:$12 sps:$4 sm:$0xff]  }
 0x17d   : > { %2693 = vmatprep.subr.bf16.mxu0 %v4032_v16  ;;  %v4103_v16 = vld [vmem:[%s4855_s5 + $0x720] ss:$12 sps:$4 sm:$0xff]  }
 0x17f   : > { %3722 = vmatpush3.bf16.msra.mxu1 %v4034_v1  ;;  %v4107_v1 = vld [vmem:[%s4855_s5 + $0x738] ss:$12 sps:$4 sm:$0xff]  }
 0x180   : > { %2694 = vmatpush1.bf16.msra.mxu0 %v4030_v63  ;;  %3723 = vmatprep.subr.bf16.mxu1 %v4038_v3  ;;  %v4109_v63 = vld [vmem:[%s4855_s5 + $0x73c] ss:$12 sps:$4 sm:$0xff]   ;;  %v1279_v3 = vrot.slane %v5106_v20, %v4860_v0  ;;  %v1209_v0 = vsub.s32 2, %v4848_v59 }
 0x181   : > { %2695 = vmatprep.subr.bf16.mxu0 %v4037_v2  ;;  %v4110_v2 = vld [vmem:[%s4855_s5 + $0x740] ss:$12 sps:$4 sm:$0xff]  }
 0x183   : > { %3724 = vmatpush3.bf16.msra.mxu1 %v4039_v7 }
 0x184   : > { %2696 = vmatpush1.bf16.msra.mxu0 %v4035_v5  ;;  %3725 = vmatprep.subr.bf16.mxu1 %v4043_v60 }
 0x185   : > { %2697 = vmatprep.subr.bf16.mxu0 %v4042_v8 }
 0x187   : > { %3726 = vmatpush3.bf16.msra.mxu1 %v4044_v10 }
 0x188   : > { %2698 = vmatpush1.bf16.msra.mxu0 %v4040_v9  ;;  %3727 = vmatprep.subr.bf16.mxu1 %v4048_v12 }
 0x189   : > { %2699 = vmatprep.subr.bf16.mxu0 %v4047_v11 }
 0x18b   : > { %3728 = vmatpush3.bf16.msra.mxu1 %v4049_v15  ;;  %v1197_v15 = vld [vmem:[%s870_s11] sm:$0x7] }
 0x18c   : > { %2700 = vmatpush1.bf16.msra.mxu0 %v4045_v4  ;;  %3729 = vmatprep.subr.bf16.mxu1 %v4053_v18 }
 0x18d   : > { %2701 = vmatprep.subr.bf16.mxu0 %v4052_v17  ;;  %v1210_v17 = vrot.slane %v1197_v15, %v1209_v0 }
 0x18f   : > { %3730 = vmatpush3.bf16.msra.mxu1 %v4054_v23 }
 0x190   : > { %2702 = vmatpush1.bf16.msra.mxu0 %v4050_v22  ;;  %2913 = vmatprep.subr.bf16.mxu1 %v4152_v28 }
 0x191   : > { %2712 = vmatprep.subr.bf16.mxu0 %v4057_v24 }
 0x192   : > { %2906 = vmatmul.mubr.bf16.vlgmr.msra.gmra.mrb[16].mxu1 %v1262_v6 }
 0x193   : > { %2704 = vmatmul.mubr.bf16.vlgmr.msra.gmra.mrb[0].mxu0 %v1262_v6  ;;  %2914 = vmatpush1.bf16.msra.mxu1 %v4058_v27 }
 0x194   : > { %2713 = vmatpush1.bf16.msra.mxu0 %v4055_v26  ;;  %2915 = vmatprep.subr.bf16.mxu1 %v4152_v28 }
 0x195   : > { %2714 = vmatprep.subr.bf16.mxu0 %v4061_v13  ;;  %3644 = vmatprep.mubr.msk.bf16.mxu0 %vm2544_vm0, %v1286_v14 }
 0x196   : > { %3645 = vmatprep.mubr.msk.bf16.mxu1 %vm2544_vm0, %v1286_v14 }
 0x197   : > { %2916 = vmatpush1.bf16.msra.mxu1 %v4062_v29 }
 0x198   : > { %2715 = vmatpush1.bf16.msra.mxu0 %v4059_v21  ;;  %2917 = vmatprep.subr.bf16.mxu1 %v4152_v28 }
 0x199   : > { %2716 = vmatprep.subr.bf16.mxu0 %v4065_v30 }
 0x19b   : > { %2918 = vmatpush1.bf16.msra.mxu1 %v4066_v19 }
 0x19c   : > { %2717 = vmatpush1.bf16.msra.mxu0 %v4063_v31  ;;  %2919 = vmatprep.subr.bf16.mxu1 %v4152_v28 }
 0x19d   : > { %2718 = vmatprep.subr.bf16.mxu0 %v4069_v32 }
 0x19f   : > { %2920 = vmatpush1.bf16.msra.mxu1 %v4070_v34  ;;  %v1201_v34 = vsub.s32 0, %v4848_v59 }
 0x1a0   : > { %2719 = vmatpush1.bf16.msra.mxu0 %v4067_v33  ;;  %2921 = vmatprep.subr.bf16.mxu1 %v4152_v28 }
 0x1a1   : > { %2720 = vmatprep.subr.bf16.mxu0 %v4073_v35  ;;  %v1205_v35 = vsub.s32 1, %v4848_v59 }
 0x1a3   : > { %2922 = vmatpush1.bf16.msra.mxu1 %v4074_v37 }
 0x1a4   : > { %2721 = vmatpush1.bf16.msra.mxu0 %v4071_v36  ;;  %2923 = vmatprep.subr.bf16.mxu1 %v4152_v28  ;;  %v4153_v36 = vmov 1983009808  }
 0x1a5   : > { %2722 = vmatprep.subr.bf16.mxu0 %v4077_v38  ;;  %v2958_v37 = vunpack.c.l.s4 %v4153_v36  ;;  %v1202_v38 = vrot.slane %v1197_v15, %v1201_v34 }
 0x1a7   : > { %2924 = vmatpush1.bf16.msra.mxu1 %v4078_v40  ;;  %v2959_v40 = vunpack.c.0.s8 %v2958_v37 }
 0x1a8   : > { %2723 = vmatpush1.bf16.msra.mxu0 %v4075_v39  ;;  %2925 = vmatprep.subr.bf16.mxu1 %v4152_v28  ;;  %v1206_v39 = vrot.slane %v1197_v15, %v1205_v35 }
 0x1a9   : > { %2724 = vmatprep.subr.bf16.mxu0 %v4081_v41 }
 0x1ab   : > { %2926 = vmatpush1.bf16.msra.mxu1 %v4082_v43 }
 0x1ac   : > { %2725 = vmatpush1.bf16.msra.mxu0 %v4079_v42  ;;  %2927 = vmatprep.subr.bf16.mxu1 %v4152_v28 }
 0x1ad   : > { %2726 = vmatprep.subr.bf16.mxu0 %v4085_v44 }
 0x1af   : > { %2928 = vmatpush1.bf16.msra.mxu1 %v4086_v46 }
 0x1b0   : > { %2727 = vmatpush1.bf16.msra.mxu0 %v4083_v45  ;;  %2929 = vmatprep.subr.bf16.mxu1 %v4152_v28 }
 0x1b1   : > { %2728 = vmatprep.subr.bf16.mxu0 %v4089_v47 }
 0x1b3   : > { %2930 = vmatpush1.bf16.msra.mxu1 %v4090_v49  ;;  %v2962_v49 = vsub.s32 %v2959_v40, %v4848_v59 }
 0x1b4   : > { %2729 = vmatpush1.bf16.msra.mxu0 %v4087_v48  ;;  %2931 = vmatprep.subr.bf16.mxu1 %v4152_v28 }
 0x1b5   : > { %2730 = vmatprep.subr.bf16.mxu0 %v4093_v50 }
 0x1b7   : > { %2932 = vmatpush1.bf16.msra.mxu1 %v4094_v52 }
 0x1b8   : > { %2731 = vmatpush1.bf16.msra.mxu0 %v4091_v51  ;;  %2933 = vmatprep.subr.bf16.mxu1 %v4152_v28 }
 0x1b9   : > { %2732 = vmatprep.subr.bf16.mxu0 %v4097_v53 }
 0x1bb   : > { %2934 = vmatpush1.bf16.msra.mxu1 %v4098_v55 }
 0x1bc   : > { %2733 = vmatpush1.bf16.msra.mxu0 %v4095_v54  ;;  %2935 = vmatprep.subr.bf16.mxu1 %v4152_v28 }
 0x1bd   : > { %2734 = vmatprep.subr.bf16.mxu0 %v4101_v56 }
 0x1bf   : > { %2936 = vmatpush1.bf16.msra.mxu1 %v4102_v58 }
 0x1c0   : > { %2735 = vmatpush1.bf16.msra.mxu0 %v4099_v57  ;;  %2937 = vmatprep.subr.bf16.mxu1 %v4152_v28 }
 0x1c1   : > { %2736 = vmatprep.subr.bf16.mxu0 %v4105_v61 }
 0x1c3   : > { %2938 = vmatpush1.bf16.msra.mxu1 %v4106_v62 }
 0x1c4   : > { %2737 = vmatpush1.bf16.msra.mxu0 %v4103_v16  ;;  %2939 = vmatprep.subr.bf16.mxu1 %v4152_v28 }
 0x1c5   : > { %2738 = vmatprep.subr.bf16.mxu0 %v4109_v63 }
 0x1c7   : > { %2940 = vmatpush1.bf16.msra.mxu1 %v4110_v2 }
 0x1c8   : > { %2739 = vmatpush1.bf16.msra.mxu0 %v4107_v1 }
 0x1ca   : > { %2946 = vmatmul.mubr.bf16.vlgmr.msra.gmra.mrb[20].mxu1 %v1279_v3 }
 0x1cb   : > { %2745 = vmatmul.mubr.bf16.vlgmr.msra.gmra.mrb[0].mxu0 %v1279_v3 }
 0x1e5   : > { %v2582_v5 = vpop.f32.mrb[0].mxu1 }
 0x1e6   : > { %v2584_v7 = vpop.f32.mrb[1].mxu1  ;;  %v2583_v41 = vadd.f32 %v2582_v5, %v1202_v38 }
 0x1e7   : > { %v2586_v8 = vpop.f32.mrb[2].mxu1  ;;  %v2585_v42 = vadd.f32 %v2584_v7, %v1206_v39 }
 0x1e8   : > { %v2587_v60 = vpop.f32.mrb[3].mxu1 }
 0x205   : > { %v3665_v9 = vpop.f32.mrb[4].mxu1 }
 0x206   : > { %v3666_v10 = vpop.f32.mrb[5].mxu1 }
 0x207   : > { %v3667_v11 = vadd.f32 %v3666_v10, %v3665_v9  ;;  %v3668_v12 = vpop.f32.mrb[6].mxu1 }
 0x208   : > { %v3669_v4 = vpop.f32.mrb[7].mxu1 }
 0x209   : > { %v2788_v22 = vadd.f32 %v3667_v11, %v1210_v17 }
 0x225   : > { %v3687_v18 = vpop.f32.mrb[8].mxu1 }
 0x226   : > { %v3688_v20 = vpop.f32.mrb[9].mxu1 }
 0x227   : > { %v3689_v23 = vadd.f32 %v3688_v20, %v3687_v18  ;;  %v3690_v24 = vpop.f32.mrb[10].mxu1 }
 0x228   : > { %v3691_v25 = vpop.f32.mrb[11].mxu1 }
 0x229   : > { %v2828_v6 = vadd.f32 %v3689_v23, %v2788_v22 }
 0x245   : > { %v3709_v26 = vpop.f32.mrb[12].mxu1 }
 0x246   : > { %v3710_v27 = vpop.f32.mrb[13].mxu1 }
 0x247   : > { %v3711_v28 = vadd.f32 %v3710_v27, %v3709_v26  ;;  %v3712_v13 = vpop.f32.mrb[14].mxu1 }
 0x248   : > { %v3713_v14 = vpop.f32.mrb[15].mxu1 }
 0x249   : > { %v2868_v21 = vadd.f32 %v3711_v28, %v2828_v6 }
 0x265   : > { %v3731_v29 = vpop.f32.mrb[16].mxu1 }
 0x266   : > { %v3732_v30 = vpop.f32.mrb[17].mxu1 }
 0x267   : > { %v3733_v31 = vadd.f32 %v3732_v30, %v3731_v29  ;;  %v3734_v19 = vpop.f32.mrb[18].mxu1 }
 0x268   : > { %v3735_v32 = vpop.f32.mrb[19].mxu1 }
 0x269   : > { %v2908_v33 = vadd.f32 %v3733_v31, %v2868_v21 }
 0x29d   : > { %v2947_v44 = vpop.f32.mrb[20].mxu1 }
 0x29e   : > { %v2746_v43 = vpop.f32.mrb[0].mxu0  ;;  %v2948_v46 = vadd.f32 %v2947_v44, %v2908_v33  ;;  %v2949_v48 = vpop.f32.mrb[21].mxu1 }
 0x29f   : > { %v3738_v45 = vadd.f32 %v2746_v43, %v2583_v41  ;;  %v2748_v47 = vpop.f32.mrb[1].mxu0  ;;  %v2950_v52 = vpop.f32.mrb[22].mxu1 }
 0x2a0   : > { %v3740_v50 = vadd.f32 %v2748_v47, %v2585_v42  ;;  %v2750_v51 = vpop.f32.mrb[2].mxu0  ;;  %v2951_v54 = vpop.f32.mrb[23].mxu1  ;;  %v2970_v56 = vrot.slane %v2948_v46, %v2962_v49 }
 0x2a1   : > { %v2751_v53 = vpop.f32.mrb[3].mxu0 }
 0x2a2   : > { %v2956_v55 = vcombine.low %v3738_v45, %v3740_v50 }
 0x2a4   : > { %v2963_v57 = vrot.slane %v2956_v55, %v2962_v49 }
 0x2a6   : > { %v2971_v58 = vcombine.low %v2963_v57, %v2970_v56 }
 0x2a8   : > { %2973 = vst [vmem:[%s880_s19] sm:$0x3f] %v2971_v58 }
 0x2a9 PF: > { %s13_s16 = sadd.s32 1, %s4149_s16   ;;  %s5207_s12 = smov %s4137_s13 }
 0x2aa   : > { %p10_p10 = scmp.ge.s32.totalorder %s13_s16, 4   ;;  %s5208_s13 = smov %s4209_s20 }
 0x2ab   : > { %s5209_s14 = smov %s4145_s15  ;;  %s5210_s15 = smov %s5212_s17 }
 0x2ac   :  { %12 = sbr.rel (!%p10_p10) target bundleno = 3 (0x3), region = 105 }

</bundles_post_ra>
